<compile_context>
chip_gen: v5e
topology: v5e:2x2
jax: 0.10.0
libtpu: 0.0.40
codegen_flags: <defaults>
</compile_context>

<pallas_src>
import functools

import jax
import jax.numpy as jnp
import numpy as np
from jax.experimental import pallas as pl
from jax.experimental.pallas import tpu as pltpu

LANE = 128


def _round_up(x, m):
    return (x + m - 1) // m * m


# -----------------------------------------------------------------------------
# Fused kernel: 3x3 conv (im2col, one MXU matmul) + bias + ReLU
#               + global-avg-pool accumulation + FC head on the last tile.
# -----------------------------------------------------------------------------
def fused_backbone_head_kernel(xpad_ref, w_ref, b_ref, fcw_ref, fcb_ref,
                               o_ref, acc_ref, *, TH, H, W, Cin):
    # xpad_ref: (H+2, W+2, Cin) bf16   padded input image for this batch element
    # w_ref:    (9*Cin, Fpad)   bf16   im2col-reshaped conv weight
    # b_ref:    (1, Fpad)       f32
    # fcw_ref:  (Fpad, OUTpad)  bf16
    # fcb_ref:  (1, OUTpad)     f32
    # o_ref:    (1, OUTpad)     f32    logits for this batch element
    # acc_ref:  (1, Fpad)       f32    running spatial sum of relu(conv)
    j = pl.program_id(1)

    @pl.when(j == 0)
    def _():
        acc_ref[...] = jnp.zeros_like(acc_ref)

    row0 = pl.multiple_of(j * TH, TH)

    # im2col through the Ref (no full-image value copy): 9 shifted (TH, W, Cin)
    # windows concatenated along the contraction dim -> ONE MXU matmul with
    # K = 9*Cin instead of nine K=Cin dots + 8 VALU accumulations.
    windows = []
    for kh in range(3):
        for kw in range(3):
            win = xpad_ref[pl.ds(row0 + kh, TH), pl.ds(kw, W), :]  # (TH, W, Cin)
            windows.append(win.reshape(TH * W, Cin))
    patch = jnp.concatenate(windows, axis=-1)                      # (TH*W, 9*Cin) bf16

    conv = jnp.dot(patch, w_ref[...], preferred_element_type=jnp.float32)
    conv = jnp.maximum(conv + b_ref[...], 0.0)                     # bias + ReLU (f32)

    # Fused AdaptiveAvgPool2d(1): accumulate the spatial sum for this tile.
    acc_ref[...] += jnp.sum(conv, axis=0, keepdims=True)

    @pl.when(j == pl.num_programs(1) - 1)
    def _():
        pooled = acc_ref[...] * (1.0 / (H * W))                    # (1, Fpad)
        # 5 dropout branches averaged == a single FC at inference.
        logits = jnp.dot(pooled.astype(jnp.bfloat16), fcw_ref[...],
                         preferred_element_type=jnp.float32) + fcb_ref[...]
        o_ref[...] = logits.astype(o_ref.dtype)


# -----------------------------------------------------------------------------
# Wrapper: NCHW input -> fused backbone(stand-in) + pool + fc head
# -----------------------------------------------------------------------------
def ranzcr_forward(x_nchw, params, *, tile_h=8):
    x = jnp.transpose(x_nchw, (0, 2, 3, 1))                        # NCHW -> NHWC
    B, H, W, Cin = x.shape
    F = params["conv_w"].shape[-1]
    OUT = params["fc_w"].shape[-1]
    Fpad = _round_up(F, LANE)
    OUTpad = _round_up(OUT, LANE)
    TH = tile_h if H % tile_h == 0 else H
    n_h = H // TH

    # TODO(synk): the halo zero-pad is one extra input pass in XLA; could be
    # folded into the kernel with masked edge taps.
    xpad = jnp.pad(x, ((0, 0), (1, 1), (1, 1), (0, 0))).astype(jnp.bfloat16)

    # Kernel-facing, lane-dense (padded to 128) weight layouts, bf16 MXU operands.
    w2 = params["conv_w"].reshape(9 * Cin, F)
    w2 = jnp.pad(w2, ((0, 0), (0, Fpad - F))).astype(jnp.bfloat16)
    b2 = jnp.pad(params["conv_b"], (0, Fpad - F)).reshape(1, Fpad).astype(jnp.float32)
    fcw = jnp.pad(params["fc_w"],
                  ((0, Fpad - F), (0, OUTpad - OUT))).astype(jnp.bfloat16)
    fcb = jnp.pad(params["fc_b"], (0, OUTpad - OUT)).reshape(1, OUTpad).astype(jnp.float32)

    kernel = functools.partial(fused_backbone_head_kernel,
                               TH=TH, H=H, W=W, Cin=Cin)

    flops = 2 * B * H * W * (9 * Cin) * Fpad + 2 * B * Fpad * OUTpad
    bytes_accessed = (xpad.size * 2 + w2.size * 2 + b2.size * 4
                      + fcw.size * 2 + fcb.size * 4 + B * OUTpad * 4)

    out = pl.pallas_call(
        kernel,
        out_shape=jax.ShapeDtypeStruct((B, 1, OUTpad), jnp.float32),
        grid_spec=pltpu.PrefetchScalarGridSpec(
            num_scalar_prefetch=0,
            grid=(B, n_h),
            in_specs=[
                pl.BlockSpec((None, H + 2, W + 2, Cin),
                             lambda b, j: (b, 0, 0, 0)),
                pl.BlockSpec((9 * Cin, Fpad), lambda b, j: (0, 0)),
                pl.BlockSpec((1, Fpad), lambda b, j: (0, 0)),
                pl.BlockSpec((Fpad, OUTpad), lambda b, j: (0, 0)),
                pl.BlockSpec((1, OUTpad), lambda b, j: (0, 0)),
            ],
            out_specs=pl.BlockSpec((None, 1, OUTpad), lambda b, j: (b, 0, 0)),
            scratch_shapes=[pltpu.VMEM((1, Fpad), jnp.float32)],
        ),
        compiler_params=pltpu.CompilerParams(
            dimension_semantics=("parallel", "arbitrary")),
        cost_estimate=pl.CostEstimate(flops=flops, transcendentals=0,
                                      bytes_accessed=bytes_accessed),
    )(xpad, w2, b2, fcw, fcb)

    return out[:, 0, :OUT]


# -----------------------------------------------------------------------------
# Plain-JAX reference with the same compute recipe (bf16 MXU, f32 accumulate)
# -----------------------------------------------------------------------------
def ranzcr_forward_ref(x_nchw, params):
    x = jnp.transpose(x_nchw, (0, 2, 3, 1))
    B, H, W, Cin = x.shape
    F = params["conv_w"].shape[-1]
    xpad = jnp.pad(x, ((0, 0), (1, 1), (1, 1), (0, 0))).astype(jnp.bfloat16)
    cols = [xpad[:, kh:kh + H, kw:kw + W, :]
            for kh in range(3) for kw in range(3)]
    patch = jnp.concatenate(cols, axis=-1)                         # (B,H,W,9*Cin)
    w2 = params["conv_w"].reshape(9 * Cin, F).astype(jnp.bfloat16)
    conv = jnp.einsum("bhwk,kf->bhwf", patch, w2,
                      preferred_element_type=jnp.float32)
    feats = jnp.maximum(conv + params["conv_b"], 0.0)
    pooled = jnp.mean(feats, axis=(1, 2))
    logits = jnp.dot(pooled.astype(jnp.bfloat16),
                     params["fc_w"].astype(jnp.bfloat16),
                     preferred_element_type=jnp.float32) + params["fc_b"]
    return logits


if __name__ == "__main__":
    # Small synthetic shapes consistent with the forward pass:
    #   x: (batch=2, channels=4, 16, 16); backbone n_features = 32; fc out = 13.
    B, Cin, H, W = 2, 4, 16, 16
    NFEAT, OUT = 32, 13

    key = jax.random.PRNGKey(0)
    kx, kcw, kcb, kfw, kfb = jax.random.split(key, 5)

    x = jax.random.normal(kx, (B, Cin, H, W), dtype=jnp.float32)
    params = {
        "conv_w": 0.1 * jax.random.normal(kcw, (3, 3, Cin, NFEAT), jnp.float32),
        "conv_b": 0.1 * jax.random.normal(kcb, (NFEAT,), jnp.float32),
        "fc_w":   0.1 * jax.random.normal(kfw, (NFEAT, OUT), jnp.float32),
        "fc_b":   0.1 * jax.random.normal(kfb, (OUT,), jnp.float32),
    }

    out = jax.block_until_ready(jax.jit(ranzcr_forward)(x, params))
    ref = jax.block_until_ready(jax.jit(ranzcr_forward_ref)(x, params))

    assert out.shape == (B, OUT), out.shape
    np.testing.assert_allclose(np.asarray(out), np.asarray(ref),
                               rtol=2e-3, atol=2e-3)
    print("KERNEL_OK")
</pallas_src>

<mosaic_0001>
module attributes {stable_mosaic.version = 11 : i64} {
  func.func @fused_backbone_head_kernel(%arg0: i32, %arg1: i32, %arg2: memref<1x18x18x4xbf16, #tpu.memory_space<vmem>>, %arg3: memref<36x128xbf16, #tpu.memory_space<vmem>>, %arg4: memref<1x128xf32, #tpu.memory_space<vmem>>, %arg5: memref<128x128xbf16, #tpu.memory_space<vmem>>, %arg6: memref<1x128xf32, #tpu.memory_space<vmem>>, %arg7: memref<1x1x128xf32, #tpu.memory_space<vmem>>, %arg8: memref<1x128xf32, #tpu.memory_space<vmem>>) attributes {dimension_semantics = [#tpu.dimension_semantics<parallel>, #tpu.dimension_semantics<arbitrary>], iteration_bounds = array<i64: 2, 2>, scalar_prefetch = 0 : i64, scratch_operands = 1 : i64, tpu.core_type = #tpu.core_type<tc>, window_params = [{transform_indices = @transform_0, window_bounds = array<i64: 1, 18, 18, 4>}, {pipeline_mode = #tpu.pipeline_mode<synchronous>, transform_indices = @transform_1, window_bounds = array<i64: 36, 128>}, {pipeline_mode = #tpu.pipeline_mode<synchronous>, transform_indices = @transform_2, window_bounds = array<i64: 1, 128>}, {pipeline_mode = #tpu.pipeline_mode<synchronous>, transform_indices = @transform_3, window_bounds = array<i64: 128, 128>}, {pipeline_mode = #tpu.pipeline_mode<synchronous>, transform_indices = @transform_4, window_bounds = array<i64: 1, 128>}, {transform_indices = @transform_5, window_bounds = array<i64: 1, 1, 128>}]} {
    %c0_i32 = arith.constant 0 : i32
    %0 = arith.cmpi eq, %arg1, %c0_i32 : i32
    %1 = arith.extui %0 : i1 to i32
    %c0_i32_0 = arith.constant 0 : i32
    %2 = arith.cmpi ne, %1, %c0_i32_0 : i32
    scf.if %2 {
      %cst_44 = arith.constant 0.000000e+00 : f32
      %66 = vector.broadcast %cst_44 : f32 to vector<1x128xf32>
      %c0_45 = arith.constant 0 : index
      %c0_46 = arith.constant 0 : index
      %67 = vector.load %arg8[%c0_45, %c0_46] : memref<1x128xf32, #tpu.memory_space<vmem>>, vector<1x128xf32>
      tpu.vector_store %arg8[%c0_45, %c0_46], %66 {strides = array<i32>} : memref<1x128xf32, #tpu.memory_space<vmem>>, vector<1x128xf32>,
    } else {
    }
    %c8_i32 = arith.constant 8 : i32
    %3 = arith.muli %arg1, %c8_i32 : i32
    %4 = tpu.assume_multiple %3, 8 : i32
    %c0_i32_1 = arith.constant 0 : i32
    %5 = arith.addi %4, %c0_i32_1 : i32
    %c0 = arith.constant 0 : index
    %6 = arith.index_cast %5 : i32 to index
    %c0_2 = arith.constant 0 : index
    %c0_3 = arith.constant 0 : index
    %7 = vector.load %arg2[%c0, %6, %c0_2, %c0_3] : memref<1x18x18x4xbf16, #tpu.memory_space<vmem>>, vector<1x8x16x4xbf16>
    %8 = vector.shape_cast %7 : vector<1x8x16x4xbf16> to vector<8x16x4xbf16>
    %9 = vector.shape_cast %8 : vector<8x16x4xbf16> to vector<128x4xbf16>
    %c0_i32_4 = arith.constant 0 : i32
    %10 = arith.addi %4, %c0_i32_4 : i32
    %c0_5 = arith.constant 0 : index
    %11 = arith.index_cast %10 : i32 to index
    %c1 = arith.constant 1 : index
    %c0_6 = arith.constant 0 : index
    %12 = vector.load %arg2[%c0_5, %11, %c1, %c0_6] : memref<1x18x18x4xbf16, #tpu.memory_space<vmem>>, vector<1x8x16x4xbf16>
    %13 = vector.shape_cast %12 : vector<1x8x16x4xbf16> to vector<8x16x4xbf16>
    %14 = vector.shape_cast %13 : vector<8x16x4xbf16> to vector<128x4xbf16>
    %c0_i32_7 = arith.constant 0 : i32
    %15 = arith.addi %4, %c0_i32_7 : i32
    %c0_8 = arith.constant 0 : index
    %16 = arith.index_cast %15 : i32 to index
    %c2 = arith.constant 2 : index
    %c0_9 = arith.constant 0 : index
    %17 = vector.load %arg2[%c0_8, %16, %c2, %c0_9] : memref<1x18x18x4xbf16, #tpu.memory_space<vmem>>, vector<1x8x16x4xbf16>
    %18 = vector.shape_cast %17 : vector<1x8x16x4xbf16> to vector<8x16x4xbf16>
    %19 = vector.shape_cast %18 : vector<8x16x4xbf16> to vector<128x4xbf16>
    %c1_i32 = arith.constant 1 : i32
    %20 = arith.addi %4, %c1_i32 : i32
    %c0_10 = arith.constant 0 : index
    %21 = arith.index_cast %20 : i32 to index
    %c0_11 = arith.constant 0 : index
    %c0_12 = arith.constant 0 : index
    %22 = vector.load %arg2[%c0_10, %21, %c0_11, %c0_12] : memref<1x18x18x4xbf16, #tpu.memory_space<vmem>>, vector<1x8x16x4xbf16>
    %23 = vector.shape_cast %22 : vector<1x8x16x4xbf16> to vector<8x16x4xbf16>
    %24 = vector.shape_cast %23 : vector<8x16x4xbf16> to vector<128x4xbf16>
    %c1_i32_13 = arith.constant 1 : i32
    %25 = arith.addi %4, %c1_i32_13 : i32
    %c0_14 = arith.constant 0 : index
    %26 = arith.index_cast %25 : i32 to index
    %c1_15 = arith.constant 1 : index
    %c0_16 = arith.constant 0 : index
    %27 = vector.load %arg2[%c0_14, %26, %c1_15, %c0_16] : memref<1x18x18x4xbf16, #tpu.memory_space<vmem>>, vector<1x8x16x4xbf16>
    %28 = vector.shape_cast %27 : vector<1x8x16x4xbf16> to vector<8x16x4xbf16>
    %29 = vector.shape_cast %28 : vector<8x16x4xbf16> to vector<128x4xbf16>
    %c1_i32_17 = arith.constant 1 : i32
    %30 = arith.addi %4, %c1_i32_17 : i32
    %c0_18 = arith.constant 0 : index
    %31 = arith.index_cast %30 : i32 to index
    %c2_19 = arith.constant 2 : index
    %c0_20 = arith.constant 0 : index
    %32 = vector.load %arg2[%c0_18, %31, %c2_19, %c0_20] : memref<1x18x18x4xbf16, #tpu.memory_space<vmem>>, vector<1x8x16x4xbf16>
    %33 = vector.shape_cast %32 : vector<1x8x16x4xbf16> to vector<8x16x4xbf16>
    %34 = vector.shape_cast %33 : vector<8x16x4xbf16> to vector<128x4xbf16>
    %c2_i32 = arith.constant 2 : i32
    %35 = arith.addi %4, %c2_i32 : i32
    %c0_21 = arith.constant 0 : index
    %36 = arith.index_cast %35 : i32 to index
    %c0_22 = arith.constant 0 : index
    %c0_23 = arith.constant 0 : index
    %37 = vector.load %arg2[%c0_21, %36, %c0_22, %c0_23] : memref<1x18x18x4xbf16, #tpu.memory_space<vmem>>, vector<1x8x16x4xbf16>
    %38 = vector.shape_cast %37 : vector<1x8x16x4xbf16> to vector<8x16x4xbf16>
    %39 = vector.shape_cast %38 : vector<8x16x4xbf16> to vector<128x4xbf16>
    %c2_i32_24 = arith.constant 2 : i32
    %40 = arith.addi %4, %c2_i32_24 : i32
    %c0_25 = arith.constant 0 : index
    %41 = arith.index_cast %40 : i32 to index
    %c1_26 = arith.constant 1 : index
    %c0_27 = arith.constant 0 : index
    %42 = vector.load %arg2[%c0_25, %41, %c1_26, %c0_27] : memref<1x18x18x4xbf16, #tpu.memory_space<vmem>>, vector<1x8x16x4xbf16>
    %43 = vector.shape_cast %42 : vector<1x8x16x4xbf16> to vector<8x16x4xbf16>
    %44 = vector.shape_cast %43 : vector<8x16x4xbf16> to vector<128x4xbf16>
    %c2_i32_28 = arith.constant 2 : i32
    %45 = arith.addi %4, %c2_i32_28 : i32
    %c0_29 = arith.constant 0 : index
    %46 = arith.index_cast %45 : i32 to index
    %c2_30 = arith.constant 2 : index
    %c0_31 = arith.constant 0 : index
    %47 = vector.load %arg2[%c0_29, %46, %c2_30, %c0_31] : memref<1x18x18x4xbf16, #tpu.memory_space<vmem>>, vector<1x8x16x4xbf16>
    %48 = vector.shape_cast %47 : vector<1x8x16x4xbf16> to vector<8x16x4xbf16>
    %49 = vector.shape_cast %48 : vector<8x16x4xbf16> to vector<128x4xbf16>
    %50 = tpu.concatenate %9, %14, %19, %24, %29, %34, %39, %44, %49 in 1 : vector<128x4xbf16>, vector<128x4xbf16>, vector<128x4xbf16>, vector<128x4xbf16>, vector<128x4xbf16>, vector<128x4xbf16>, vector<128x4xbf16>, vector<128x4xbf16>, vector<128x4xbf16> -> vector<128x36xbf16>
    %c0_32 = arith.constant 0 : index
    %c0_33 = arith.constant 0 : index
    %51 = vector.load %arg3[%c0_32, %c0_33] : memref<36x128xbf16, #tpu.memory_space<vmem>>, vector<36x128xbf16>
    %cst = arith.constant dense<0.000000e+00> : vector<128x128xf32>
    %52 = tpu.matmul %50, %51, %cst {dimension_numbers = #tpu.dot_dimension_numbers<[1], [0], [0], [1], [0, 0, 1, 1], [], []>} : vector<128x36xbf16>, vector<36x128xbf16>, vector<128x128xf32> -> vector<128x128xf32>
    %c0_34 = arith.constant 0 : index
    %c0_35 = arith.constant 0 : index
    %53 = vector.load %arg4[%c0_34, %c0_35] : memref<1x128xf32, #tpu.memory_space<vmem>>, vector<1x128xf32>
    %54 = vector.broadcast %53 : vector<1x128xf32> to vector<128x128xf32>
    %55 = arith.addf %52, %54 : vector<128x128xf32>
    %cst_36 = arith.constant 0.000000e+00 : f32
    %56 = vector.broadcast %cst_36 : f32 to vector<128x128xf32>
    %57 = arith.maximumf %55, %56 : vector<128x128xf32>
    %c0_37 = arith.constant 0 : index
    %c0_38 = arith.constant 0 : index
    %58 = vector.load %arg8[%c0_37, %c0_38] : memref<1x128xf32, #tpu.memory_space<vmem>>, vector<1x128xf32>
    %cst_39 = arith.constant dense<0.000000e+00> : vector<128xf32>
    %59 = vector.multi_reduction <add>, %57, %cst_39 [0] : vector<128x128xf32> to vector<128xf32>
    %60 = vector.shape_cast %59 : vector<128xf32> to vector<1x128xf32>
    %61 = arith.addf %58, %60 : vector<1x128xf32>
    %c0_40 = arith.constant 0 : index
    %c0_41 = arith.constant 0 : index
    %62 = vector.load %arg8[%c0_40, %c0_41] : memref<1x128xf32, #tpu.memory_space<vmem>>, vector<1x128xf32>
    tpu.vector_store %arg8[%c0_40, %c0_41], %61 {strides = array<i32>} : memref<1x128xf32, #tpu.memory_space<vmem>>, vector<1x128xf32>,
    %c1_i32_42 = arith.constant 1 : i32
    %63 = arith.cmpi eq, %arg1, %c1_i32_42 : i32
    %64 = arith.extui %63 : i1 to i32
    %c0_i32_43 = arith.constant 0 : i32
    %65 = arith.cmpi ne, %64, %c0_i32_43 : i32
    scf.if %65 {
      %c0_44 = arith.constant 0 : index
      %c0_45 = arith.constant 0 : index
      %66 = vector.load %arg8[%c0_44, %c0_45] : memref<1x128xf32, #tpu.memory_space<vmem>>, vector<1x128xf32>
      %cst_46 = arith.constant 3.906250e-03 : f32
      %67 = vector.broadcast %cst_46 : f32 to vector<1x128xf32>
      %68 = arith.mulf %66, %67 : vector<1x128xf32>
      %69 = arith.truncf %68 : vector<1x128xf32> to vector<1x128xbf16>
      %c0_47 = arith.constant 0 : index
      %c0_48 = arith.constant 0 : index
      %70 = vector.load %arg5[%c0_47, %c0_48] : memref<128x128xbf16, #tpu.memory_space<vmem>>, vector<128x128xbf16>
      %cst_49 = arith.constant dense<0.000000e+00> : vector<1x128xf32>
      %71 = tpu.matmul %69, %70, %cst_49 {dimension_numbers = #tpu.dot_dimension_numbers<[1], [0], [0], [1], [0, 0, 1, 1], [], []>} : vector<1x128xbf16>, vector<128x128xbf16>, vector<1x128xf32> -> vector<1x128xf32>
      %c0_50 = arith.constant 0 : index
      %c0_51 = arith.constant 0 : index
      %72 = vector.load %arg6[%c0_50, %c0_51] : memref<1x128xf32, #tpu.memory_space<vmem>>, vector<1x128xf32>
      %73 = arith.addf %71, %72 : vector<1x128xf32>
      %c0_52 = arith.constant 0 : index
      %c0_53 = arith.constant 0 : index
      %c0_54 = arith.constant 0 : index
      %74 = vector.load %arg7[%c0_52, %c0_53, %c0_54] : memref<1x1x128xf32, #tpu.memory_space<vmem>>, vector<1x1x128xf32>
      %75 = vector.shape_cast %74 : vector<1x1x128xf32> to vector<1x128xf32>
      %76 = vector.shape_cast %73 : vector<1x128xf32> to vector<1x1x128xf32>
      tpu.vector_store %arg7[%c0_52, %c0_53, %c0_54], %76 {strides = array<i32>} : memref<1x1x128xf32, #tpu.memory_space<vmem>>, vector<1x1x128xf32>,
    } else {
    }
    return
  }
  func.func @transform_0(%arg0: i32, %arg1: i32) -> (i32, i32, i32, i32) {
    %c0_i32 = arith.constant 0 : i32
    %c0_i32_0 = arith.constant 0 : i32
    %c0_i32_1 = arith.constant 0 : i32
    %c0_i32_2 = arith.constant 0 : i32
    return %arg0, %c0_i32, %c0_i32_0, %c0_i32_1 : i32, i32, i32, i32
  }
  func.func @transform_1(%arg0: i32, %arg1: i32) -> (i32, i32) {
    %c0_i32 = arith.constant 0 : i32
    %c0_i32_0 = arith.constant 0 : i32
    %c0_i32_1 = arith.constant 0 : i32
    return %c0_i32, %c0_i32_0 : i32, i32
  }
  func.func @transform_2(%arg0: i32, %arg1: i32) -> (i32, i32) {
    %c0_i32 = arith.constant 0 : i32
    %c0_i32_0 = arith.constant 0 : i32
    %c0_i32_1 = arith.constant 0 : i32
    return %c0_i32, %c0_i32_0 : i32, i32
  }
  func.func @transform_3(%arg0: i32, %arg1: i32) -> (i32, i32) {
    %c0_i32 = arith.constant 0 : i32
    %c0_i32_0 = arith.constant 0 : i32
    %c0_i32_1 = arith.constant 0 : i32
    return %c0_i32, %c0_i32_0 : i32, i32
  }
  func.func @transform_4(%arg0: i32, %arg1: i32) -> (i32, i32) {
    %c0_i32 = arith.constant 0 : i32
    %c0_i32_0 = arith.constant 0 : i32
    %c0_i32_1 = arith.constant 0 : i32
    return %c0_i32, %c0_i32_0 : i32, i32
  }
  func.func @transform_5(%arg0: i32, %arg1: i32) -> (i32, i32, i32) {
    %c0_i32 = arith.constant 0 : i32
    %c0_i32_0 = arith.constant 0 : i32
    %c0_i32_1 = arith.constant 0 : i32
    return %arg0, %c0_i32, %c0_i32_0 : i32, i32, i32
  }
}

</mosaic_0001>

<bundles_post_ra>
// kernel: ranzcr_forward.1
= control target key start
LH: loop header
LB: loop body
LE: loop exit
PB: predicated region body
PF: predicated region fallthrough
CT: control target
= control target key end

     0   :  { %10 = vsyncpa [#allocation4], 0  ;;  %s3399_s0 = inlined_call_operand.vmem [shape: bf16[2,18,18,4], index: 0, kind: input, shape index: {}]   ;;  %s3400_s1 = inlined_call_operand.vmem [shape: bf16[36,128], index: 1, kind: input, shape index: {}]   ;;  %s3401_s2 = inlined_call_operand.vmem [shape: f32[1,128], index: 2, kind: input, shape index: {}]   ;;  %s3402_s3 = inlined_call_operand.vmem [shape: bf16[128,128], index: 3, kind: input, shape index: {}]   ;;  %s3403_s4 = inlined_call_operand.vmem [shape: f32[1,128], index: 4, kind: input, shape index: {}]   ;;  %s3404_s5 = inlined_call_operand.hbm [shape: f32[2,1,128], index: 5, kind: output, shape index: {}]  }
   0x1   :  { %12 = vsyncpa [#allocation4 + $0x1], 0  ;;  %s2501_s18 = smov 0   ;;  %s2503_s19 = smov 0  }
   0x2   :  { %s2505_s20 = smov 0   ;;  %s2507_s21 = smov 0  }
   0x3   :  { %s2509_s22 = smov 0   ;;  %s2511_s23 = smov 0  }
   0x4   :  { %s2513_s24 = smov 0   ;;  %s2515_s25 = smov 0  }
   0x5 LB: > { %s1991_s26 = sadd.s32 4294967295, %s2460_s25   ;;  %s1992_s27 = sadd.s32 4294967294, %s2460_s25   ;;  %s2460_s25 = sphi %s2515_s25, %s18_s25   ;;  %s2456_s24 = sphi %s2513_s24, %s3419_s24   ;;  %s2452_s23 = sphi %s2511_s23, %s3418_s23   ;;  %s2448_s22 = sphi %s2509_s22, %s3417_s22   ;;  %s2444_s21 = sphi %s2507_s21, %s3416_s21   ;;  %s2440_s20 = sphi %s2505_s20, %s3415_s20   ;;  %s2436_s19 = sphi %s2503_s19, %s3414_s19   ;;  %s2432_s18 = sphi %s2501_s18, %s3413_s18  }
   0x6   : > { %s27_s28 = sadd.s32 1, %s2452_s23  ;;  %s30_s29 = sadd.s32 1, %s2456_s24 }
   0x7   : > { %p28_p0 = scmp.ge.s32.totalorder %s27_s28, 2  ;;  %p157_p1 = scmp.ne.s32.totalorder %s2440_s20, %s2436_s19 }
   0x8   : > { %p158_p2 = scmp.eq.s32.totalorder %s1991_s26, 3  ;;  %p163_p4 = scmp.ne.s32.totalorder %s2436_s19, %s2432_s18 }
   0x9   : > { %s3421_s28 = smov (%p28_p0, %s27_s28), 0  ;;  %s3423_s29 = smov (!%p28_p0, %s30_s29), %s2456_s24 }
   0xa   : > { %p2550_p3 = por %p158_p2, %p157_p1  ;;  %p32_p5 = scmp.ge.s32.totalorder %s3423_s29, 2 }
   0xb   : > { %p164_p6 = scmp.eq.s32.totalorder %s1992_s27, 3  ;;  %p1995_p7 = scmp.ge.s32.totalorder %s2460_s25, 1 }
   0xc   : > { %p202_p8 = scmp.lt.s32.totalorder %s2460_s25, 5  ;;  %s3425_s29 = smov (%p32_p5, %s3423_s29), 0 }
   0xd   : > { %p2560_p9 = por %p164_p6, %p163_p4  ;;  %s144_s7 = ssub.s32 %s2456_s24, %s3425_s29 }
   0xe   : > { %p203_p10 = pnand %p1995_p7, %p202_p8  ;;  %s147_s8 = sadd.s32 1, %s2440_s20 }
   0xf   : > { %p145_p11 = scmp.eq.s32.totalorder %s144_s7, 0  ;;  %s3405_s10 = sand.u32 (!%p203_p10), 1, %s2436_s19  }
  0x10   : > { %206 = sbr.rel (%p203_p10) target bundleno = 668 (0x29c), region = 40  ;;  %p229_p12 = scmp.lt.s32.totalorder (!%p203_p10), %s2448_s22, 1 }
  0x11   : > { %s2568_s9 = scalar_select %p145_p11, %s2440_s20, %s147_s8  }
  0x12   : > { %s2578_s16 = scalar_lea.vmem (!%p203_p10), [#allocation3], %s3405_s10  ;;  %p1997_p13 = scmp.ne.s32.totalorder (!%p203_p10), %s2444_s21, 0 }
  0x15   : > { %s230_s11 = scalar_select %p229_p12, %s2448_s22, 1 }
  0x16   : > { %238 = sbr.rel (%p1997_p13) target bundleno = 29 (0x1d), region = 44 }
  0x17   : > { %s2284_s12 = smul.u32 216, %s230_s11 }
  0x19   : > { %s233_s15 = scalar_lea.vmem %s3399_s0, %s2284_s12 }
  0x1b   : > { %v2462_v0 = vmov 0.0  }
  0x1c   : > { %239 = vst [vmem:[#allocation2] sm:$0x1] %v2462_v0 }
  0x1d PF: > { %s2240_s17 = smul.u32 96, %s2444_s21  ;;  %vm495_vm0 = vcmask 1042432   ;;  %vm496_vm1 = vcmask 1046532   ;;  %vm268_vm2 = vsmask.f32 3328  ;;  %s2463_s27 = smov 12  }
  0x1e   : > { %vm269_vm3 = vsmask.f32 7440  ;;  %vm2588_vm4 = vmor %vm495_vm0, %vm496_vm1  ;;  %s2464_s7 = smov 24   ;;  %s2465_s8 = smov 8   ;;  %vm1723_vm6 = vcmask 1041408   ;;  %vm1538_vm7 = vcmask 31744  }
  0x1f   : > { %s2582_s26 = scalar_lea.vmem %s233_s15, %s2240_s17  ;;  %vm2618_vm5 = vmor %vm268_vm2, %vm269_vm3  ;;  %s2466_s11 = smov 32   ;;  %vm1563_vm8 = vcmask 64512   ;;  %vm1580_vm9 = vcmask 97280   ;;  %vm1597_vm10 = vcmask 130048   ;;  %vm1614_vm11 = vcmask 162816  }
  0x20   : > { %v2249_v1 = vld [vmem:[%s2582_s26 + $0xc] sm:$0xff]  ;;  %v245_v2 = vld [vmem:[%s2582_s26 + $0x4] sm:$0xf]  ;;  %v260_v3 = vld [vmem:[%s2582_s26 + $0x8] sm:$0x1]  ;;  %s2467_s12 = smov 4  }
  0x21   : > { %v291_v4 = vshll.u32 %v260_v3, 16  ;;  %v463_v5 = vld [vmem:[%s2582_s26] sm:$0xe]  ;;  %v500_v7 = vrot.slane %v245_v2, 5  ;;  %v503_v8 = vrot.slane %v260_v3, 5  ;;  %v285_v9 = vshrl.u32 %v245_v2, 16  ;;  %1314 = vrot.lane.b32.xlu1 %v2249_v1, %s2463_s27 }
  0x22   : > { %v2001_v10 = vrot.slane %v463_v5, 9  ;;  %v2594_v11 = vld [vmem:[%s2582_s26 + $0x1c] sm:$0xf]  ;;  %v2597_v12 = vld [vmem:[%s2582_s26 + $0x20] sm:$0x1]  ;;  %v281_v13 = vshll.u32 %v245_v2, 16 }
  0x23   : > { %v502_v14 = vrot.slane %v500_v7, 4  ;;  %v2077_v15 = vld [vmem:[%s2582_s26 + $0x18] sm:$0xe]  ;;  %v1116_v16 = vrot.slane %v2594_v11, 5  ;;  %v1119_v17 = vrot.slane %v2597_v12, 5  ;;  %v287_v18 = vrot.slane %v285_v9, 4 }
  0x24   : > { %v501_v19 = vsel %vm2588_vm4, %v2001_v10, %v500_v7  ;;  %v2085_v20 = vrot.slane %v2077_v15, 9  ;;  %v244_v21 = vld [vmem:[%s2582_s26] sm:$0xf]  ;;  %v283_v22 = vrot.slane %v281_v13, 5  ;;  %v293_v23 = vrot.slane %v291_v4, 5  ;;  %v2257_v34 = vld [vmem:[%s2582_s26 + $0x18] sm:$0xff] }
  0x25   : > { %v504_v24 = vsel %vm2588_vm4, %v502_v14, %v503_v8  ;;  %v1242_v25 = vunpack.c.l.b16 %v501_v19  ;;  %v1118_v26 = vrot.slane %v1116_v16, 4  ;;  %v272_v27 = vshrl.u32 %v244_v21, 16  ;;  %v2011_v28 = vld [vmem:[%s2582_s26 + $0xc] sm:$0xf]  ;;  %v2611_v33 = vld [vmem:[%s2582_s26 + $0x10] sm:$0xf]  ;;  %1442 = vrot.lane.b32.xlu2 %v2257_v34, %s2464_s7 }
  0x26   : > { %v1243_v29 = vunpack.c.l.b16 %v504_v24  ;;  %v1117_v30 = vsel %vm2588_vm4, %v2085_v20, %v1116_v16  ;;  %v275_v31 = vshll.u32 %v244_v21, 16  ;;  %v288_v32 = vor.u32 %v287_v18, %v283_v22  ;;  %v2623_v39 = vld [vmem:[%s2582_s26 + $0x14] sm:$0x1]  ;;  %v2053_v49 = vld [vmem:[%s2582_s26 + $0x18] sm:$0xf]  ;;  %s2468_s13 = smov 16  }
  0x27   : > { %v1120_v35 = vsel %vm2588_vm4, %v1118_v26, %v1119_v17  ;;  %v1498_v36 = vunpack.c.l.b16 %v1117_v30  ;;  %v274_v38 = vrot.slane %v272_v27, 4  ;;  %v583_v40 = vshrl.u32 %v2011_v28, 16  ;;  %v252_v2 = vld [vmem:[%s2582_s26 + $0x30] sm:$0xf]  ;;  %v2641_v17 = vld [vmem:[%s2582_s26 + $0x34] sm:$0xf] }
  0x28   : > { %v1258_v41 = vpack.c.b16 %v1243_v29, %v1242_v25  ;;  %v1499_v42 = vunpack.c.l.b16 %v1120_v35  ;;  %v277_v43 = vrot.slane %v275_v31, 5  ;;  %v289_v44 = vrot.slane %v288_v32, 4  ;;  %v2651_v26 = vld [vmem:[%s2582_s26 + $0x1c] sm:$0xf]  ;;  %v465_v31 = vld [vmem:[%s2582_s26 + $0x18] sm:$0xe] }
  0x29   : > { %v585_v45 = vrot.slane %v583_v40, 4  ;;  %v586_v46 = vshll.u32 %v2011_v28, 16  ;;  %v592_v47 = vshll.u32 %v2611_v33, 16  ;;  %v596_v48 = vshrl.u32 %v2611_v33, 16  ;;  %s2469_s14 = smov 28   ;;  %s2470_s15 = smov 20  }
  0x2a   : > { %1266 = vrot.lane.b32.xlu0 %v1258_v41, %s2465_s8  ;;  %v1514_v50 = vpack.c.b16 %v1499_v42, %v1498_v36  ;;  %v278_v51 = vor.u32 %v277_v43, %v274_v38  ;;  %v294_v52 = vsel %vm2618_vm5, %v289_v44, %v293_v23  ;;  %v602_v53 = vshll.u32 %v2623_v39, 16  ;;  %v2661_v38 = vld [vmem:[%s2582_s26 + $0x20] sm:$0x1]  ;;  %v2015_v44 = vld [vmem:[%s2582_s26 + $0x24] sm:$0xf]  ;;  %p2205_p0 = scmp.ne.s32.totalorder %s2444_s21, 1 }
  0x2b   : > { %v1203_v54 = vunpack.c.l.b16 %v294_v52  ;;  %v588_v55 = vrot.slane %v586_v46, 5  ;;  %v594_v56 = vrot.slane %v592_v47, 5  ;;  %v598_v57 = vrot.slane %v596_v48, 4 }
  0x2c   : > { %1522 = vrot.lane.b32.xlu1 %v1514_v50, %s2466_s11  ;;  %v279_v58 = vrot.slane %v278_v51, 4  ;;  %v604_v59 = vrot.slane %v602_v53, 5  ;;  %v891_v60 = vshrl.u32 %v2053_v49, 16  ;;  %v894_v61 = vshll.u32 %v2053_v49, 16 }
  0x2d   : > { %v589_v62 = vor.u32 %v588_v55, %v585_v45  ;;  %v599_v63 = vor.u32 %v598_v57, %v594_v56  ;;  %v900_v0 = vshll.u32 %v2594_v11, 16  ;;  %v904_v1 = vshrl.u32 %v2594_v11, 16  ;;  %v2672_v55 = vld [vmem:[%s2582_s26 + $0x28] sm:$0xf] }
  0x2e   : > { %v284_v3 = vsel %vm2618_vm5, %v279_v58, %v283_v22  ;;  %v893_v4 = vrot.slane %v891_v60, 4  ;;  %v896_v5 = vrot.slane %v894_v61, 5  ;;  %v910_v7 = vshll.u32 %v2597_v12, 16  ;;  %v2648_v12 = vld [vmem:[%s2582_s26 + $0x38] sm:$0x1] }
  0x2f   : > { %v1202_v8 = vunpack.c.l.b16 %v284_v3  ;;  %v590_v9 = vrot.slane %v589_v62, 4  ;;  %v600_v10 = vrot.slane %v599_v63, 4  ;;  %v902_v13 = vrot.slane %v900_v0, 5  ;;  %v2677_v62 = vld [vmem:[%s2582_s26 + $0x2c] sm:$0x1] }
  0x30   : > { %v897_v14 = vor.u32 %v896_v5, %v893_v4  ;;  %v906_v15 = vrot.slane %v904_v1, 4  ;;  %v912_v16 = vrot.slane %v910_v7, 5  ;;  %v368_v11 = vshrl.u32 %v252_v2, 16  ;;  %v2035_v63 = vld [vmem:[%s2582_s26 + $0xc] sm:$0xe] }
  0x31   : > { %v1218_v18 = vpack.c.b16 %v1203_v54, %v1202_v8  ;;  %v595_v19 = vsel %vm2618_vm5, %v590_v9, %v594_v56  ;;  %v605_v20 = vsel %vm2618_vm5, %v600_v10, %v604_v59  ;;  %v371_v21 = vshll.u32 %v252_v2, 16 }
  0x32   : > { %v1330_v22 = vunpack.c.l.b16 %v595_v19  ;;  %v1331_v23 = vunpack.c.l.b16 %v605_v20  ;;  %v898_v24 = vrot.slane %v897_v14, 4  ;;  %v907_v25 = vor.u32 %v906_v15, %v902_v13  ;;  %v467_v15 = vld [vmem:[%s2582_s26 + $0x30] sm:$0xe] }
  0x33   : > { %1226 = vrot.lane.b32.xlu0 %v1218_v18, %s2467_s12  ;;  %v370_v27 = vrot.slane %v368_v11, 4  ;;  %v373_v28 = vrot.slane %v371_v21, 5  ;;  %v377_v29 = vshll.u32 %v2641_v17, 16  ;;  %v381_v30 = vshrl.u32 %v2641_v17, 16 }
  0x34   : > { %v1346_v32 = vpack.c.b16 %v1331_v23, %v1330_v22  ;;  %v903_v34 = vsel %vm2618_vm5, %v898_v24, %v902_v13  ;;  %v908_v35 = vrot.slane %v907_v25, 4  ;;  %v387_v36 = vshll.u32 %v2648_v12, 16  ;;  %v2019_v24 = vld [vmem:[%s2582_s26 + $0x3c] sm:$0xf] }
  0x35   : > { %v1458_v40 = vunpack.c.l.b16 %v903_v34  ;;  %v374_v41 = vor.u32 %v373_v28, %v370_v27  ;;  %v379_v42 = vrot.slane %v377_v29, 5  ;;  %v383_v43 = vrot.slane %v381_v30, 4 }
  0x36   : > { %1354 = vrot.lane.b32.xlu1 %v1346_v32, %s2468_s13  ;;  %v913_v45 = vsel %vm2618_vm5, %v908_v35, %v912_v16  ;;  %v389_v46 = vrot.slane %v387_v36, 5  ;;  %v2003_v47 = vrot.slane %v465_v31, 9  ;;  %v514_v48 = vrot.slane %v2651_v26, 5 }
  0x37   : > { %v1459_v49 = vunpack.c.l.b16 %v913_v45  ;;  %v375_v50 = vrot.slane %v374_v41, 4  ;;  %v384_v51 = vor.u32 %v383_v43, %v379_v42  ;;  %v517_v52 = vrot.slane %v2661_v38, 5 }
  0x38   : > { %v515_v53 = vsel %vm2588_vm4, %v2003_v47, %v514_v48  ;;  %v516_v54 = vrot.slane %v514_v48, 4  ;;  %v631_v56 = vshrl.u32 %v2015_v44, 16  ;;  %v634_v57 = vshll.u32 %v2015_v44, 16  ;;  %v2707_v44 = vld [vmem:[%s2582_s26 + $0x44] sm:$0x1] }
  0x39   : > { %v1474_v58 = vpack.c.b16 %v1459_v49, %v1458_v40  ;;  %v380_v59 = vsel %vm2618_vm5, %v375_v50, %v379_v42  ;;  %v385_v60 = vrot.slane %v384_v51, 4  ;;  %v1246_v61 = vunpack.c.l.b16 %v515_v53  ;;  %v248_v48 = vld [vmem:[%s2582_s26 + $0x18] sm:$0xf] }
  0x3a   : > { %v1210_v0 = vunpack.c.l.b16 %v380_v59  ;;  %v518_v1 = vsel %vm2588_vm4, %v516_v54, %v517_v52  ;;  %v633_v2 = vrot.slane %v631_v56, 4  ;;  %v636_v3 = vrot.slane %v634_v57, 5 }
  0x3b   : > { %1482 = vrot.lane.b32.xlu0 %v1474_v58, %s2469_s14  ;;  %v390_v4 = vsel %vm2618_vm5, %v385_v60, %v389_v46  ;;  %v1247_v5 = vunpack.c.l.b16 %v518_v1  ;;  %v640_v7 = vshll.u32 %v2672_v55, 16  ;;  %v644_v8 = vshrl.u32 %v2672_v55, 16 }
  0x3c   : > { %v1211_v9 = vunpack.c.l.b16 %v390_v4  ;;  %v637_v10 = vor.u32 %v636_v3, %v633_v2  ;;  %v650_v13 = vshll.u32 %v2677_v62, 16  ;;  %v2043_v14 = vrot.slane %v2035_v63, 9  ;;  %v2037_v63 = vld [vmem:[%s2582_s26 + $0x24] sm:$0xe] }
  0x3d   : > { %v1260_v16 = vpack.c.b16 %v1247_v5, %v1246_v61  ;;  %v642_v11 = vrot.slane %v640_v7, 5  ;;  %v646_v18 = vrot.slane %v644_v8, 4  ;;  %v808_v19 = vrot.slane %v2611_v33, 5 }
  0x3e   : > { %v1222_v20 = vpack.c.b16 %v1211_v9, %v1210_v0  ;;  %v638_v21 = vrot.slane %v637_v10, 4  ;;  %v652_v22 = vrot.slane %v650_v13, 5  ;;  %v811_v23 = vrot.slane %v2623_v39, 5  ;;  %v2700_v39 = vld [vmem:[%s2582_s26 + $0x40] sm:$0xf] }
  0x3f   : > { %v647_v25 = vor.u32 %v646_v18, %v642_v11  ;;  %v809_v27 = vsel %vm2588_vm4, %v2043_v14, %v808_v19  ;;  %v810_v28 = vrot.slane %v808_v19, 4  ;;  %v2005_v29 = vrot.slane %v467_v15, 9  ;;  %v2057_v19 = vld [vmem:[%s2582_s26 + $0x30] sm:$0xf] }
  0x40   : > { %1234 = vrot.lane.b32.xlu1 %v1222_v20, %s2467_s12  ;;  %v643_v30 = vsel %vm2618_vm5, %v638_v21, %v642_v11  ;;  %v1370_v31 = vunpack.c.l.b16 %v809_v27  ;;  %v528_v33 = vrot.slane %v2641_v17, 5  ;;  %v531_v32 = vrot.slane %v2648_v12, 5 }
  0x41   : > { %v648_v34 = vrot.slane %v647_v25, 4  ;;  %v1334_v35 = vunpack.c.l.b16 %v643_v30  ;;  %v812_v36 = vsel %vm2588_vm4, %v810_v28, %v811_v23  ;;  %v679_v40 = vshrl.u32 %v2019_v24, 16  ;;  %v2735_v28 = vld [vmem:[%s2582_s26 + $0x34] sm:$0xf] }
  0x42   : > { %v1371_v41 = vunpack.c.l.b16 %v812_v36  ;;  %v529_v42 = vsel %vm2588_vm4, %v2005_v29, %v528_v33  ;;  %v530_v43 = vrot.slane %v528_v33, 4  ;;  %v682_v45 = vshll.u32 %v2019_v24, 16 }
  0x43   : > { %1270 = vrot.lane.b32.xlu0 %v1260_v16, %s2465_s8  ;;  %v653_v17 = vsel %vm2618_vm5, %v648_v34, %v652_v22  ;;  %v1250_v12 = vunpack.c.l.b16 %v529_v42  ;;  %v681_v46 = vrot.slane %v679_v40, 4  ;;  %v688_v47 = vshll.u32 %v2700_v39, 16  ;;  %v2742_v34 = vld [vmem:[%s2582_s26 + $0x38] sm:$0x1]  ;;  %v2039_v42 = vld [vmem:[%s2582_s26 + $0x3c] sm:$0xe] }
  0x44   : > { %v1335_v49 = vunpack.c.l.b16 %v653_v17  ;;  %v1386_v50 = vpack.c.b16 %v1371_v41, %v1370_v31  ;;  %v532_v51 = vsel %vm2588_vm4, %v530_v43, %v531_v32  ;;  %v684_v52 = vrot.slane %v682_v45, 5 }
  0x45   : > { %v1251_v53 = vunpack.c.l.b16 %v532_v51  ;;  %v690_v54 = vrot.slane %v688_v47, 5  ;;  %v692_v56 = vshrl.u32 %v2700_v39, 16  ;;  %v698_v57 = vshll.u32 %v2707_v44, 16 }
  0x46   : > { %v1348_v58 = vpack.c.b16 %v1335_v49, %v1334_v35  ;;  %1394 = vrot.lane.b32.xlu2 %v1386_v50, %s2470_s15  ;;  %v685_v59 = vor.u32 %v684_v52, %v681_v46  ;;  %v320_v60 = vshrl.u32 %v248_v48, 16  ;;  %v323_v61 = vshll.u32 %v248_v48, 16  ;;  %v246_v50 = vld [vmem:[%s2582_s26 + $0xc] sm:$0xf] }
  0x47   : > { %v1262_v0 = vpack.c.b16 %v1251_v53, %v1250_v12  ;;  %v694_v1 = vrot.slane %v692_v56, 4  ;;  %v700_v2 = vrot.slane %v698_v57, 5  ;;  %v329_v3 = vshll.u32 %v2651_v26, 16  ;;  %v2754_v56 = vld [vmem:[%s2582_s26 + $0x10] sm:$0xf] }
  0x48   : > { %1358 = vrot.lane.b32.xlu1 %v1348_v58, %s2468_s13  ;;  %v686_v4 = vrot.slane %v685_v59, 4  ;;  %v322_v5 = vrot.slane %v320_v60, 4  ;;  %v325_v7 = vrot.slane %v323_v61, 5  ;;  %v333_v8 = vshrl.u32 %v2651_v26, 16 }
  0x49   : > { %v695_v9 = vor.u32 %v694_v1, %v690_v54  ;;  %v331_v10 = vrot.slane %v329_v3, 5  ;;  %v339_v13 = vshll.u32 %v2661_v38, 16  ;;  %v2045_v14 = vrot.slane %v2037_v63, 9  ;;  %v2764_v3 = vld [vmem:[%s2582_s26 + $0x14] sm:$0x1] }
  0x4a   : > { %v691_v15 = vsel %vm2618_vm5, %v686_v4, %v690_v54  ;;  %v326_v16 = vor.u32 %v325_v7, %v322_v5  ;;  %v335_v11 = vrot.slane %v333_v8, 4  ;;  %v822_v18 = vrot.slane %v2672_v55, 5 }
  0x4b   : > { %1274 = vrot.lane.b32.xlu0 %v1262_v0, %s2465_s8  ;;  %v696_v20 = vrot.slane %v695_v9, 4  ;;  %v1338_v21 = vunpack.c.l.b16 %v691_v15  ;;  %v341_v26 = vrot.slane %v339_v13, 5  ;;  %v825_v22 = vrot.slane %v2677_v62, 5 }
  0x4c   : > { %v327_v23 = vrot.slane %v326_v16, 4  ;;  %v336_v38 = vor.u32 %v335_v11, %v331_v10  ;;  %v823_v24 = vsel %vm2588_vm4, %v2045_v14, %v822_v18  ;;  %v824_v25 = vrot.slane %v822_v18, 4 }
  0x4d   : > { %v701_v27 = vsel %vm2618_vm5, %v696_v20, %v700_v2  ;;  %v1374_v55 = vunpack.c.l.b16 %v823_v24  ;;  %v939_v29 = vshrl.u32 %v2057_v19, 16  ;;  %v942_v30 = vshll.u32 %v2057_v19, 16 }
  0x4e   : > { %v1339_v31 = vunpack.c.l.b16 %v701_v27  ;;  %v332_v33 = vsel %vm2618_vm5, %v327_v23, %v331_v10  ;;  %v337_v62 = vrot.slane %v336_v38, 4  ;;  %v826_v32 = vsel %vm2588_vm4, %v824_v25, %v825_v22  ;;  %v2251_v22 = vld [vmem:[%s2582_s26 + $0x24] sm:$0xff]  ;;  %v2780_v25 = vld [vmem:[%s2582_s26 + $0x50] sm:$0x1] }
  0x4f   : > { %v1206_v35 = vunpack.c.l.b16 %v332_v33  ;;  %v1375_v36 = vunpack.c.l.b16 %v826_v32  ;;  %v941_v40 = vrot.slane %v939_v29, 4  ;;  %v944_v41 = vrot.slane %v942_v30, 5  ;;  %v2081_v27 = vld [vmem:[%s2582_s26 + $0x48] sm:$0xe]  ;;  %v464_v33 = vld [vmem:[%s2582_s26 + $0xc] sm:$0xe] }
  0x50   : > { %v1350_v43 = vpack.c.b16 %v1339_v31, %v1338_v21  ;;  %v342_v45 = vsel %vm2618_vm5, %v337_v62, %v341_v26  ;;  %v948_v17 = vshll.u32 %v2735_v28, 16  ;;  %v952_v12 = vshrl.u32 %v2735_v28, 16  ;;  %v2776_v21 = vld [vmem:[%s2582_s26 + $0x4c] sm:$0xf] }
  0x51   : > { %v1207_v46 = vunpack.c.l.b16 %v342_v45  ;;  %v1388_v47 = vpack.c.b16 %v1375_v36, %v1374_v55  ;;  %v945_v48 = vor.u32 %v944_v41, %v941_v40  ;;  %v958_v49 = vshll.u32 %v2742_v34, 16 }
  0x52   : > { %1362 = vrot.lane.b32.xlu1 %v1350_v43, %s2468_s13  ;;  %v950_v51 = vrot.slane %v948_v17, 5  ;;  %v954_v52 = vrot.slane %v952_v12, 4  ;;  %v2047_v53 = vrot.slane %v2039_v42, 9  ;;  %v836_v54 = vrot.slane %v2700_v39, 5 }
  0x53   : > { %v1220_v57 = vpack.c.b16 %v1207_v46, %v1206_v35  ;;  %1398 = vrot.lane.b32.xlu0 %v1388_v47, %s2470_s15  ;;  %v946_v58 = vrot.slane %v945_v48, 4  ;;  %v960_v59 = vrot.slane %v958_v49, 5  ;;  %v839_v60 = vrot.slane %v2707_v44, 5  ;;  %v2079_v44 = vld [vmem:[%s2582_s26 + $0x30] sm:$0xe] }
  0x54   : > { %v955_v61 = vor.u32 %v954_v52, %v950_v51  ;;  %v837_v63 = vsel %vm2588_vm4, %v2047_v53, %v836_v54  ;;  %v838_v0 = vrot.slane %v836_v54, 4  ;;  %v296_v1 = vshrl.u32 %v246_v50, 16  ;;  %v2800_v49 = vld [vmem:[%s2582_s26 + $0x4c] sm:$0xf]  ;;  %v2807_v54 = vld [vmem:[%s2582_s26 + $0x50] sm:$0x1] }
  0x55   : > { %1230 = vrot.lane.b32.xlu2 %v1220_v57, %s2467_s12  ;;  %v951_v39 = vsel %vm2618_vm5, %v946_v58, %v950_v51  ;;  %v1378_v2 = vunpack.c.l.b16 %v837_v63  ;;  %v299_v4 = vshll.u32 %v246_v50, 16  ;;  %v305_v5 = vshll.u32 %v2754_v56, 16  ;;  %v469_v50 = vld [vmem:[%s2582_s26 + $0x48] sm:$0xe]  ;;  %v2253_v58 = vld [vmem:[%s2582_s26 + $0x3c] sm:$0xff] }
  0x56   : > { %v956_v7 = vrot.slane %v955_v61, 4  ;;  %v1462_v8 = vunpack.c.l.b16 %v951_v39  ;;  %v840_v9 = vsel %vm2588_vm4, %v838_v0, %v839_v60  ;;  %v298_v10 = vrot.slane %v296_v1, 4  ;;  %v2036_v61 = vld [vmem:[%s2582_s26 + $0x18] sm:$0xe] }
  0x57   : > { %v1379_v13 = vunpack.c.l.b16 %v840_v9  ;;  %v301_v14 = vrot.slane %v299_v4, 5  ;;  %v307_v15 = vrot.slane %v305_v5, 5  ;;  %v309_v16 = vshrl.u32 %v2754_v56, 16 }
  0x58   : > { %v961_v11 = vsel %vm2618_vm5, %v956_v7, %v960_v59  ;;  %v315_v18 = vshll.u32 %v2764_v3, 16  ;;  %v2087_v19 = vrot.slane %v2079_v44, 9  ;;  %v1130_v20 = vrot.slane %v2735_v28, 5 }
  0x59   : > { %v1463_v26 = vunpack.c.l.b16 %v961_v11  ;;  %v1390_v23 = vpack.c.b16 %v1379_v13, %v1378_v2  ;;  %v302_v38 = vor.u32 %v301_v14, %v298_v10  ;;  %v311_v24 = vrot.slane %v309_v16, 4  ;;  %v2817_v2 = vld [vmem:[%s2582_s26 + $0x1c] sm:$0xf] }
  0x5a   : > { %v317_v55 = vrot.slane %v315_v18, 5  ;;  %v1131_v29 = vsel %vm2588_vm4, %v2087_v19, %v1130_v20  ;;  %v1132_v30 = vrot.slane %v1130_v20, 4  ;;  %v1133_v31 = vrot.slane %v2742_v34, 5 }
  0x5b   : > { %v1476_v62 = vpack.c.b16 %v1463_v26, %v1462_v8  ;;  %1402 = vrot.lane.b32.xlu0 %v1390_v23, %s2470_s15  ;;  %v303_v28 = vrot.slane %v302_v38, 4  ;;  %v312_v32 = vor.u32 %v311_v24, %v307_v15  ;;  %v1502_v35 = vunpack.c.l.b16 %v1131_v29  ;;  %v2824_v8 = vld [vmem:[%s2582_s26 + $0x20] sm:$0x1]  ;;  %v2041_v26 = vld [vmem:[%s2582_s26 + $0x54] sm:$0xe] }
  0x5c   : > { %v1134_v36 = vsel %vm2588_vm4, %v1132_v30, %v1133_v31  ;;  %v2089_v40 = vrot.slane %v2081_v27, 9  ;;  %v1144_v41 = vrot.slane %v2776_v21, 5  ;;  %v1147_v42 = vrot.slane %v2780_v25, 5  ;;  %v2838_v27 = vld [vmem:[%s2582_s26 + $0x58] sm:$0xf] }
  0x5d   : > { %1486 = vrot.lane.b32.xlu1 %v1476_v62, %s2469_s14  ;;  %1318 = vrot.lane.b32.xlu2 %v2251_v22, %s2463_s27  ;;  %v308_v34 = vsel %vm2618_vm5, %v303_v28, %v307_v15  ;;  %v313_v43 = vrot.slane %v312_v32, 4  ;;  %v1503_v45 = vunpack.c.l.b16 %v1134_v36  ;;  %v2002_v17 = vrot.slane %v464_v33, 9  ;;  %v256_v62 = vld [vmem:[%s2582_s26 + $0x48] sm:$0xf] }
  0x5e   : > { %v1204_v12 = vunpack.c.l.b16 %v308_v34  ;;  %v1145_v46 = vsel %vm2588_vm4, %v2089_v40, %v1144_v41  ;;  %v1146_v47 = vrot.slane %v1144_v41, 4  ;;  %v507_v48 = vrot.slane %v2754_v56, 5  ;;  %v2259_v40 = vld [vmem:[%s2582_s26 + $0x30] sm:$0xff] }
  0x5f   : > { %v318_v51 = vsel %vm2618_vm5, %v313_v43, %v317_v55  ;;  %v1516_v52 = vpack.c.b16 %v1503_v45, %v1502_v35  ;;  %v510_v53 = vrot.slane %v2764_v3, 5  ;;  %v1506_v63 = vunpack.c.l.b16 %v1145_v46  ;;  %v2061_v3 = vld [vmem:[%s2582_s26 + $0x48] sm:$0xf]  ;;  %v2841_v55 = vld [vmem:[%s2582_s26 + $0x5c] sm:$0x1] }
  0x60   : > { %v1205_v57 = vunpack.c.l.b16 %v318_v51  ;;  %v1148_v59 = vsel %vm2588_vm4, %v1146_v47, %v1147_v42  ;;  %v508_v56 = vsel %vm2588_vm4, %v2002_v17, %v507_v48  ;;  %v509_v60 = vrot.slane %v507_v48, 4 }
  0x61   : > { %v1507_v0 = vunpack.c.l.b16 %v1148_v59  ;;  %v2007_v1 = vrot.slane %v469_v50, 9  ;;  %v542_v39 = vrot.slane %v2800_v49, 5  ;;  %v1244_v44 = vunpack.c.l.b16 %v508_v56 }
  0x62   : > { %v1219_v4 = vpack.c.b16 %v1205_v57, %v1204_v12  ;;  %v511_v5 = vsel %vm2588_vm4, %v509_v60, %v510_v53  ;;  %v545_v7 = vrot.slane %v2807_v54, 5  ;;  %v2044_v13 = vrot.slane %v2036_v61, 9 }
  0x63   : > { %1526 = vrot.lane.b32.xlu0 %v1516_v52, %s2466_s11  ;;  %v1245_v9 = vunpack.c.l.b16 %v511_v5  ;;  %v544_v10 = vrot.slane %v542_v39, 4  ;;  %v543_v14 = vsel %vm2588_vm4, %v2007_v1, %v542_v39  ;;  %v815_v15 = vrot.slane %v2817_v2, 5  ;;  %v2866_v1 = vld [vmem:[%s2582_s26 + $0x28] sm:$0xf]  ;;  %v2078_v39 = vld [vmem:[%s2582_s26 + $0x24] sm:$0xe] }
  0x64   : > { %v987_v16 = vshrl.u32 %v2061_v3, 16  ;;  %v818_v18 = vrot.slane %v2824_v8, 5  ;;  %v990_v19 = vshll.u32 %v2061_v3, 16  ;;  %v996_v20 = vshll.u32 %v2776_v21, 16  ;;  %v2250_v3 = vld [vmem:[%s2582_s26 + $0x18] sm:$0xff] }
  0x65   : > { %1228 = vrot.lane.b32.xlu1 %v1219_v4, %s2467_s12  ;;  %1322 = vrot.lane.b32.xlu2 %v2253_v58, %s2463_s27  ;;  %v546_v11 = vsel %vm2588_vm4, %v544_v10, %v545_v7  ;;  %v1518_v22 = vpack.c.b16 %v1507_v0, %v1506_v63  ;;  %v1259_v23 = vpack.c.b16 %v1245_v9, %v1244_v44  ;;  %v817_v38 = vrot.slane %v815_v15, 4 }
  0x66   : > { %v989_v24 = vrot.slane %v987_v16, 4  ;;  %v816_v29 = vsel %vm2588_vm4, %v2044_v13, %v815_v15  ;;  %v992_v30 = vrot.slane %v990_v19, 5  ;;  %v998_v31 = vrot.slane %v996_v20, 5  ;;  %v2878_v15 = vld [vmem:[%s2582_s26 + $0x2c] sm:$0x1] }
  0x67   : > { %v1000_v33 = vshrl.u32 %v2776_v21, 16  ;;  %v1254_v28 = vunpack.c.l.b16 %v543_v14  ;;  %v1255_v32 = vunpack.c.l.b16 %v546_v11  ;;  %v1006_v35 = vshll.u32 %v2780_v25, 16 }
  0x68   : > { %v2049_v36 = vrot.slane %v2041_v26, 9  ;;  %v819_v41 = vsel %vm2588_vm4, %v817_v38, %v818_v18  ;;  %v993_v42 = vor.u32 %v992_v30, %v989_v24  ;;  %v850_v43 = vrot.slane %v2838_v27, 5 }
  0x69   : > { %v1002_v34 = vrot.slane %v1000_v33, 4  ;;  %v1372_v45 = vunpack.c.l.b16 %v816_v29  ;;  %v853_v17 = vrot.slane %v2841_v55, 5  ;;  %v416_v12 = vshrl.u32 %v256_v62, 16 }
  0x6a   : > { %v419_v46 = vshll.u32 %v256_v62, 16  ;;  %v994_v21 = vrot.slane %v993_v42, 4  ;;  %v1008_v48 = vrot.slane %v1006_v35, 5  ;;  %v851_v25 = vsel %vm2588_vm4, %v2049_v36, %v850_v43  ;;  %v466_v35 = vld [vmem:[%s2582_s26 + $0x24] sm:$0xe] }
  0x6b   : > { %1268 = vrot.lane.b32.xlu0 %v1259_v23, %s2465_s8  ;;  %v1003_v47 = vor.u32 %v1002_v34, %v998_v31  ;;  %v1373_v50 = vunpack.c.l.b16 %v819_v41  ;;  %v852_v51 = vrot.slane %v850_v43, 4  ;;  %v418_v52 = vrot.slane %v416_v12, 4  ;;  %v2906_v34 = vld [vmem:[%s2582_s26 + $0x2c] sm:$0x1] }
  0x6c   : > { %v421_v53 = vrot.slane %v419_v46, 5  ;;  %v999_v57 = vsel %vm2618_vm5, %v994_v21, %v998_v31  ;;  %v425_v59 = vshll.u32 %v2800_v49, 16  ;;  %v429_v56 = vshrl.u32 %v2800_v49, 16  ;;  %v2013_v49 = vld [vmem:[%s2582_s26 + $0x18] sm:$0xf] }
  0x6d   : > { %1530 = vrot.lane.b32.xlu1 %v1518_v22, %s2466_s11  ;;  %1446 = vrot.lane.b32.xlu2 %v2259_v40, %s2464_s7  ;;  %v1004_v58 = vrot.slane %v1003_v47, 4  ;;  %v854_v60 = vsel %vm2588_vm4, %v852_v51, %v853_v17  ;;  %v1382_v61 = vunpack.c.l.b16 %v851_v25  ;;  %v435_v0 = vshll.u32 %v2807_v54, 16  ;;  %v2261_v54 = vld [vmem:[%s2582_s26 + $0x48] sm:$0xff]  ;;  %v2065_v46 = vld [vmem:[%s2582_s26 + $0x60] sm:$0xf] }
  0x6e   : > { %v422_v63 = vor.u32 %v421_v53, %v418_v52  ;;  %v1383_v5 = vunpack.c.l.b16 %v854_v60  ;;  %v427_v44 = vrot.slane %v425_v59, 5  ;;  %v431_v7 = vrot.slane %v429_v56, 4  ;;  %v2889_v31 = vld [vmem:[%s2582_s26 + $0x28] sm:$0xf]  ;;  %v2255_v21 = vld [vmem:[%s2582_s26 + $0x54] sm:$0xff] }
  0x6f   : > { %v1009_v4 = vsel %vm2618_vm5, %v1004_v58, %v1008_v48  ;;  %v1264_v9 = vpack.c.b16 %v1255_v32, %v1254_v28  ;;  %v2873_v10 = vunpack.c.l.b16 %v999_v57  ;;  %v437_v11 = vrot.slane %v435_v0, 5 }
  0x70   : > { %v2875_v13 = vunpack.c.l.b16 %v1009_v4  ;;  %v423_v14 = vrot.slane %v422_v63, 4  ;;  %v432_v16 = vor.u32 %v431_v7, %v427_v44  ;;  %v2086_v18 = vrot.slane %v2078_v39, 9  ;;  %v2927_v63 = vld [vmem:[%s2582_s26 + $0x68] sm:$0x1] }
  0x71   : > { %v1123_v19 = vrot.slane %v2866_v1, 5  ;;  %v1387_v20 = vpack.c.b16 %v1373_v50, %v1372_v45  ;;  %v2882_v26 = vpack.c.b16 %v1383_v5, %v1382_v61  ;;  %v607_v22 = vshrl.u32 %v2013_v49, 16 }
  0x72   : > { %v610_v23 = vshll.u32 %v2013_v49, 16  ;;  %v428_v38 = vsel %vm2618_vm5, %v423_v14, %v427_v44  ;;  %v433_v24 = vrot.slane %v432_v16, 4  ;;  %v1126_v30 = vrot.slane %v2878_v15, 5 }
  0x73   : > { %1316 = vrot.lane.b32.xlu0 %v2250_v3, %s2463_s27  ;;  %v1125_v29 = vrot.slane %v1123_v19, 4  ;;  %v1478_v33 = vpack.c.b16 %v2875_v13, %v2873_v10  ;;  %v609_v62 = vrot.slane %v607_v22, 4  ;;  %v616_v32 = vshll.u32 %v2817_v2, 16  ;;  %v2023_v3 = vld [vmem:[%s2582_s26 + $0x54] sm:$0xf] }
  0x74   : > { %v612_v28 = vrot.slane %v610_v23, 5  ;;  %v438_v36 = vsel %vm2618_vm5, %v433_v24, %v437_v11  ;;  %v2901_v40 = vsel %vm2588_vm4, %v2086_v18, %v1123_v19  ;;  %v620_v41 = vshrl.u32 %v2817_v2, 16  ;;  %v2258_v24 = vld [vmem:[%s2582_s26 + $0x24] sm:$0xff] }
  0x75   : > { %1278 = vrot.lane.b32.xlu1 %v1264_v9, %s2465_s8  ;;  %1450 = vrot.lane.b32.xlu2 %v2261_v54, %s2464_s7  ;;  %v626_v42 = vshll.u32 %v2824_v8, 16  ;;  %v2908_v43 = vunpack.c.l.b16 %v428_v38  ;;  %v2910_v45 = vunpack.c.l.b16 %v438_v36  ;;  %v618_v12 = vrot.slane %v616_v32, 5  ;;  %v2918_v8 = vld [vmem:[%s2582_s26 + $0x64] sm:$0xf]  ;;  %v254_v38 = vld [vmem:[%s2582_s26 + $0x3c] sm:$0xf] }
  0x76   : > { %v613_v17 = vor.u32 %v612_v28, %v609_v62  ;;  %v1127_v47 = vsel %vm2588_vm4, %v1125_v29, %v1126_v30  ;;  %v622_v48 = vrot.slane %v620_v41, 4  ;;  %v2004_v25 = vrot.slane %v466_v35, 9 }
  0x77   : > { %v521_v2 = vrot.slane %v2889_v31, 5  ;;  %v1500_v50 = vunpack.c.l.b16 %v2901_v40  ;;  %v628_v52 = vrot.slane %v626_v42, 5  ;;  %v524_v53 = vrot.slane %v2906_v34, 5  ;;  %v2952_v42 = vld [vmem:[%s2582_s26 + $0x40] sm:$0xf] }
  0x78   : > { %v614_v51 = vrot.slane %v613_v17, 4  ;;  %v623_v57 = vor.u32 %v622_v48, %v618_v12  ;;  %v1035_v56 = vshrl.u32 %v2065_v46, 16  ;;  %v1224_v60 = vpack.c.b16 %v2910_v45, %v2908_v43 }
  0x79   : > { %v522_v58 = vsel %vm2588_vm4, %v2004_v25, %v521_v2  ;;  %v523_v59 = vrot.slane %v521_v2, 4  ;;  %v1501_v61 = vunpack.c.l.b16 %v1127_v47  ;;  %v1038_v0 = vshll.u32 %v2065_v46, 16 }
  0x7a   : > { %v1044_v39 = vshll.u32 %v2918_v8, 16  ;;  %v619_v4 = vsel %vm2618_vm5, %v614_v51, %v618_v12  ;;  %v624_v5 = vrot.slane %v623_v57, 4  ;;  %v1037_v7 = vrot.slane %v1035_v56, 4 }
  0x7b   : > { %1326 = vrot.lane.b32.xlu0 %v2255_v21, %s2463_s27  ;;  %v525_v44 = vsel %vm2588_vm4, %v523_v59, %v524_v53  ;;  %v1248_v49 = vunpack.c.l.b16 %v522_v58  ;;  %v1040_v9 = vrot.slane %v1038_v0, 5  ;;  %v1048_v13 = vshrl.u32 %v2918_v8, 16 }
  0x7c   : > { %v1046_v10 = vrot.slane %v1044_v39, 5  ;;  %v629_v14 = vsel %vm2618_vm5, %v624_v5, %v628_v52  ;;  %v1054_v54 = vshll.u32 %v2927_v63, 16  ;;  %v727_v16 = vshrl.u32 %v2023_v3, 16  ;;  %v2055_v52 = vld [vmem:[%s2582_s26 + $0x24] sm:$0xf] }
  0x7d   : > { %1396 = vrot.lane.b32.xlu1 %v1387_v20, %s2470_s15  ;;  %1490 = vrot.lane.b32.xlu2 %v1478_v33, %s2469_s14  ;;  %v730_v11 = vshll.u32 %v2023_v3, 16  ;;  %v2942_v18 = vunpack.c.l.b16 %v619_v4  ;;  %v1249_v19 = vunpack.c.l.b16 %v525_v44  ;;  %v1041_v22 = vor.u32 %v1040_v9, %v1037_v7  ;;  %v2263_v3 = vld [vmem:[%s2582_s26 + $0x60] sm:$0xff] }
  0x7e   : > { %v1050_v23 = vrot.slane %v1048_v13, 4  ;;  %v2946_v29 = vunpack.c.l.b16 %v629_v14  ;;  %v729_v20 = vrot.slane %v727_v16, 4  ;;  %v736_v33 = vshll.u32 %v2838_v27, 16  ;;  %v2017_v16 = vld [vmem:[%s2582_s26 + $0x30] sm:$0xf] }
  0x7f   : > { %v732_v30 = vrot.slane %v730_v11, 5  ;;  %v1042_v62 = vrot.slane %v1041_v22, 4  ;;  %v1056_v32 = vrot.slane %v1054_v54, 5  ;;  %v740_v35 = vshrl.u32 %v2838_v27, 16  ;;  %v2958_v27 = vld [vmem:[%s2582_s26 + $0x44] sm:$0x1] }
  0x80   : > { %v1051_v28 = vor.u32 %v1050_v23, %v1046_v10  ;;  %v738_v40 = vrot.slane %v736_v33, 5  ;;  %v746_v41 = vshll.u32 %v2841_v55, 16  ;;  %v392_v43 = vshrl.u32 %v254_v38, 16  ;;  %v2983_v23 = vld [vmem:[%s2582_s26 + $0x34] sm:$0xf] }
  0x81   : > { %v733_v36 = vor.u32 %v732_v30, %v729_v20  ;;  %v1515_v45 = vpack.c.b16 %v1501_v61, %v1500_v50  ;;  %v742_v12 = vrot.slane %v740_v35, 4  ;;  %v395_v46 = vshll.u32 %v254_v38, 16 }
  0x82   : > { %v1052_v17 = vrot.slane %v1051_v28, 4  ;;  %v1047_v21 = vsel %vm2618_vm5, %v1042_v62, %v1046_v10  ;;  %v748_v48 = vrot.slane %v746_v41, 5  ;;  %v394_v25 = vrot.slane %v392_v43, 4 }
  0x83   : > { %1444 = vrot.lane.b32.xlu0 %v2258_v24, %s2464_s7  ;;  %v734_v47 = vrot.slane %v733_v36, 4  ;;  %v743_v2 = vor.u32 %v742_v12, %v738_v40  ;;  %v397_v51 = vrot.slane %v395_v46, 5  ;;  %v401_v50 = vshll.u32 %v2952_v42, 16 }
  0x84   : > { %v1057_v55 = vsel %vm2618_vm5, %v1052_v17, %v1056_v32  ;;  %v1347_v53 = vpack.c.b16 %v2946_v29, %v2942_v18  ;;  %v2969_v57 = vpack.c.b16 %v1249_v19, %v1248_v49  ;;  %v405_v59 = vshrl.u32 %v2952_v42, 16 }
  0x85   : > { %1406 = vrot.lane.b32.xlu1 %v2882_v26, %s2470_s15  ;;  %1238 = vrot.lane.b32.xlu2 %v1224_v60, %s2467_s12  ;;  %v739_v58 = vsel %vm2618_vm5, %v734_v47, %v738_v40  ;;  %v744_v56 = vrot.slane %v743_v2, 4  ;;  %v398_v61 = vor.u32 %v397_v51, %v394_v25  ;;  %v403_v0 = vrot.slane %v401_v50, 5  ;;  %v250_v40 = vld [vmem:[%s2582_s26 + $0x24] sm:$0xf] }
  0x86   : > { %v411_v39 = vshll.u32 %v2958_v27, 16  ;;  %v1470_v26 = vunpack.c.l.b16 %v1047_v21  ;;  %v1471_v4 = vunpack.c.l.b16 %v1057_v55  ;;  %v407_v60 = vrot.slane %v405_v59, 4 }
  0x87   : > { %v915_v5 = vshrl.u32 %v2055_v52, 16  ;;  %v749_v44 = vsel %vm2618_vm5, %v744_v56, %v748_v48  ;;  %v399_v7 = vrot.slane %v398_v61, 4  ;;  %v918_v49 = vshll.u32 %v2055_v52, 16 }
  0x88   : > { %v924_v9 = vshll.u32 %v2866_v1, 16  ;;  %v1342_v10 = vunpack.c.l.b16 %v739_v58  ;;  %v408_v13 = vor.u32 %v407_v60, %v403_v0  ;;  %v928_v54 = vshrl.u32 %v2866_v1, 16  ;;  %v2989_v1 = vld [vmem:[%s2582_s26 + $0x38] sm:$0x1]  ;;  %v1686_v58 = vld [vmem:[%s3400_s1 + $0x10] sm:$0x3] }
  0x89   : > { %v917_v14 = vrot.slane %v915_v5, 4  ;;  %v413_v11 = vrot.slane %v411_v39, 5  ;;  %v920_v18 = vrot.slane %v918_v49, 5  ;;  %v934_v22 = vshll.u32 %v2878_v15, 16 }
  0x8a   : > { %v926_v19 = vrot.slane %v924_v9, 5  ;;  %v1480_v38 = vpack.c.b16 %v1471_v4, %v1470_v26  ;;  %v1343_v24 = vunpack.c.l.b16 %v749_v44  ;;  %v409_v29 = vrot.slane %v408_v13, 4 }
  0x8b   : > { %1454 = vrot.lane.b32.xlu0 %v2263_v3, %s2464_s7  ;;  %v930_v20 = vrot.slane %v928_v54, 4  ;;  %v404_v30 = vsel %vm2618_vm5, %v399_v7, %v403_v0  ;;  %v921_v33 = vor.u32 %v920_v18, %v917_v14  ;;  %v655_v62 = vshrl.u32 %v2017_v16, 16  ;;  %v2021_v54 = vld [vmem:[%s2582_s26 + $0x48] sm:$0xf] }
  0x8c   : > { %v658_v28 = vshll.u32 %v2017_v16, 16  ;;  %v936_v32 = vrot.slane %v934_v22, 5  ;;  %v664_v35 = vshll.u32 %v2983_v23, 16  ;;  %v668_v36 = vshrl.u32 %v2983_v23, 16 }
  0x8d   : > { %1524 = vrot.lane.b32.xlu1 %v1515_v45, %s2466_s11  ;;  %1356 = vrot.lane.b32.xlu2 %v1347_v53, %s2468_s13  ;;  %v931_v15 = vor.u32 %v930_v20, %v926_v19  ;;  %v414_v41 = vsel %vm2618_vm5, %v409_v29, %v413_v11  ;;  %v922_v43 = vrot.slane %v921_v33, 4  ;;  %v657_v17 = vrot.slane %v655_v62, 4  ;;  %v2252_v29 = vld [vmem:[%s2582_s26 + $0x30] sm:$0xff] }
  0x8e   : > { %v660_v12 = vrot.slane %v658_v28, 5  ;;  %v666_v21 = vrot.slane %v664_v35, 5  ;;  %v670_v47 = vrot.slane %v668_v36, 4  ;;  %v674_v45 = vshll.u32 %v2989_v1, 16 }
  0x8f   : > { %v932_v46 = vrot.slane %v931_v15, 4  ;;  %v1352_v48 = vpack.c.b16 %v1343_v24, %v1342_v10  ;;  %v1212_v25 = vunpack.c.l.b16 %v404_v30  ;;  %v344_v2 = vshrl.u32 %v250_v40, 16  ;;  %v3024_v24 = vld [vmem:[%s2582_s26 + $0x50] sm:$0x1]  ;;  %v2266_v15 = vld [vmem:[%s3400_s1 + $0x8] sm:$0xff] }
  0x90   : > { %v661_v55 = vor.u32 %v660_v12, %v657_v17  ;;  %v1213_v51 = vunpack.c.l.b16 %v414_v41  ;;  %v927_v50 = vsel %vm2618_vm5, %v922_v43, %v926_v19  ;;  %v671_v53 = vor.u32 %v670_v47, %v666_v21  ;;  %v3039_v41 = vpop.permute.xlu2 %1442 }
  0x91   : > { %v937_v52 = vsel %vm2618_vm5, %v932_v46, %v936_v32  ;;  %v676_v56 = vrot.slane %v674_v45, 5  ;;  %v346_v61 = vrot.slane %v344_v2, 4  ;;  %v347_v0 = vshll.u32 %v250_v40, 16  ;;  %v2083_v40 = vld [vmem:[%s2582_s26 + $0x60] sm:$0xe] }
  0x92   : > { %v662_v59 = vrot.slane %v661_v55, 4  ;;  %v672_v39 = vrot.slane %v671_v53, 4  ;;  %v353_v3 = vshll.u32 %v2889_v31, 16  ;;  %v357_v26 = vshrl.u32 %v2889_v31, 16 }
  0x93   : > { %1494 = vrot.lane.b32.xlu0 %v1480_v38, %s2469_s14  ;;  %v363_v4 = vshll.u32 %v2906_v34, 16  ;;  %v3010_v60 = vpop.permute.xlu1 %1314  ;;  %v1460_v5 = vunpack.c.l.b16 %v927_v50  ;;  %v1461_v44 = vunpack.c.l.b16 %v937_v52  ;;  %v349_v7 = vrot.slane %v347_v0, 5  ;;  %v2059_v52 = vld [vmem:[%s2582_s26 + $0x3c] sm:$0xf]  ;;  %v3062_v0 = vld [vmem:[%s2582_s26 + $0x40] sm:$0xf] }
  0x94   : > { %v1700_v49 = vunpack.c.l.b16 %v1686_v58  ;;  %v355_v9 = vrot.slane %v353_v3, 5  ;;  %v359_v10 = vrot.slane %v357_v26, 4  ;;  %v667_v31 = vsel %vm2618_vm5, %v662_v59, %v666_v21 }
  0x95   : > { %1272 = vrot.lane.b32.xlu1 %v2969_v57, %s2465_s8  ;;  %1366 = vrot.lane.b32.xlu2 %v1352_v48, %s2468_s13  ;;  %v677_v34 = vsel %vm2618_vm5, %v672_v39, %v676_v56  ;;  %v350_v13 = vor.u32 %v349_v7, %v346_v61  ;;  %v1223_v16 = vpack.c.b16 %v1213_v51, %v1212_v25  ;;  %v365_v18 = vrot.slane %v363_v4, 5  ;;  %v3021_v57 = vld [vmem:[%s2582_s26 + $0x4c] sm:$0xf]  ;;  %v2265_v61 = vld [vmem:[%s3400_s1] sm:$0xff] }
  0x96   : > { %v1703_v14 = vpack.c.b16 %v1700_v49, %v1700_v49  ;;  %v360_v11 = vor.u32 %v359_v10, %v355_v9  ;;  %v1475_v19 = vpack.c.b16 %v1461_v44, %v1460_v5  ;;  %v3027_v20 = vunpack.c.l.b16 %v667_v31  ;;  %v2254_v5 = vld [vmem:[%s2582_s26 + $0x48] sm:$0xff]  ;;  %v3071_v7 = vld [vmem:[%s2582_s26 + $0x44] sm:$0x1] }
  0x97   : > { %v351_v22 = vrot.slane %v350_v13, 4  ;;  %v3029_v30 = vunpack.c.l.b16 %v677_v34  ;;  %v703_v62 = vshrl.u32 %v2021_v54, 16  ;;  %v706_v32 = vshll.u32 %v2021_v54, 16  ;;  %v2241_v31 = vld [vmem:[%s2582_s26] sm:$0xff] }
  0x98   : > { %v1725_v38 = vsel %vm1723_vm6, %v1703_v14, 0  ;;  %v361_v33 = vrot.slane %v360_v11, 4  ;;  %v712_v35 = vshll.u32 %v3021_v57, 16  ;;  %v716_v36 = vshrl.u32 %v3021_v57, 16 }
  0x99   : > { %1732 = vmatpush.bf16.msra.mxu0 %v1725_v38  ;;  %2275 = vmatpush.bf16.msra.mxu1 %v1725_v38  ;;  %v356_v28 = vsel %vm2618_vm5, %v351_v22, %v355_v9  ;;  %v705_v12 = vrot.slane %v703_v62, 4  ;;  %v722_v46 = vshll.u32 %v3024_v24, 16  ;;  %v708_v45 = vrot.slane %v706_v32, 5 }
  0x9a   : > { %2276 = vmatpush.bf16.msra.mxu2 %v1725_v38  ;;  %2277 = vmatpush.bf16.msra.mxu3 %v1725_v38  ;;  %v366_v43 = vsel %vm2618_vm5, %v361_v33, %v365_v18  ;;  %v3044_v17 = vunpack.c.l.b16 %v356_v28  ;;  %v714_v48 = vrot.slane %v712_v35, 5  ;;  %v718_v25 = vrot.slane %v716_v36, 4  ;;  %v2063_v35 = vld [vmem:[%s2582_s26 + $0x54] sm:$0xf] }
  0x9b   : > { %1236 = vrot.lane.b32.xlu0 %v1223_v16, %s2467_s12  ;;  %v1209_v47 = vunpack.c.l.b16 %v366_v43  ;;  %v1349_v55 = vpack.c.b16 %v3029_v30, %v3027_v20  ;;  %v2091_v2 = vrot.slane %v2083_v40, 9  ;;  %v1158_v51 = vrot.slane %v2918_v8, 5  ;;  %v468_v16 = vld [vmem:[%s2582_s26 + $0x3c] sm:$0xe] }
  0x9c   : > { %v3047_v21 = vpop.permute.xlu0 %1266  ;;  %v1161_v50 = vrot.slane %v2927_v63, 5  ;;  %v709_v58 = vor.u32 %v708_v45, %v705_v12  ;;  %v719_v59 = vor.u32 %v718_v25, %v714_v48  ;;  %v724_v56 = vrot.slane %v722_v46, 5 }
  0x9d   : > { %1320 = vrot.lane.b32.xlu1 %v2252_v29, %s2463_s27  ;;  %1484 = vrot.lane.b32.xlu2 %v1475_v19, %s2469_s14  ;;  %v1159_v8 = vsel %vm2588_vm4, %v2091_v2, %v1158_v51  ;;  %v1160_v63 = vrot.slane %v1158_v51, 4  ;;  %v1221_v39 = vpack.c.b16 %v1209_v47, %v3044_v17  ;;  %v963_v49 = vshrl.u32 %v2059_v52, 16  ;;  %v2260_v51 = vld [vmem:[%s2582_s26 + $0x3c] sm:$0xff] }
  0x9e   : > { %v3056_v53 = vpop.permute.xlu1 %1522  ;;  %1733 = vmatpush.bf16.msra.mxu0 %v2266_v15  ;;  %2278 = vmatpush.bf16.msra.mxu1 %v2266_v15  ;;  %v710_v3 = vrot.slane %v709_v58, 4  ;;  %v720_v26 = vrot.slane %v719_v59, 4  ;;  %v1510_v4 = vunpack.c.l.b16 %v1159_v8  ;;  %v966_v9 = vshll.u32 %v2059_v52, 16  ;;  %v2064_v52 = vld [vmem:[%s2582_s26 + $0x58] sm:$0xf] }
  0x9f   : > { %2279 = vmatpush.bf16.msra.mxu2 %v2266_v15  ;;  %2280 = vmatpush.bf16.msra.mxu3 %v2266_v15  ;;  %v1162_v44 = vsel %vm2588_vm4, %v1160_v63, %v1161_v50  ;;  %v972_v10 = vshll.u32 %v3062_v0, 16  ;;  %vm1631_vm12 = vcmask 195584   ;;  %v976_v54 = vshrl.u32 %v3062_v0, 16  ;;  %v3103_v58 = vld [vmem:[%s2582_s26 + $0x5c] sm:$0x1] }
  0xa0   : > { %v715_v34 = vsel %vm2618_vm5, %v710_v3, %v714_v48  ;;  %v725_v13 = vsel %vm2618_vm5, %v720_v26, %v724_v56  ;;  %v1511_v14 = vunpack.c.l.b16 %v1162_v44  ;;  %vm1648_vm13 = vcmask 228352   ;;  %v1395_v30 = vpop.permute.xlu2 %1394  ;;  %v2038_v8 = vld [vmem:[%s2582_s26 + $0x30] sm:$0xe] }
  0xa1   : > { %v1340_v11 = vunpack.c.l.b16 %v715_v34  ;;  %v1341_v18 = vunpack.c.l.b16 %v725_v13  ;;  %v965_v19 = vrot.slane %v963_v49, 4  ;;  %v968_v22 = vrot.slane %v966_v9, 5 }
  0xa2   : > { %1734 = vmatpush.bf16.msra.mxu0 %v2265_v61  ;;  %2281 = vmatpush.bf16.msra.mxu1 %v2265_v61  ;;  %vm1665_vm14 = vcmask 261120   ;;  %v974_v38 = vrot.slane %v972_v10, 5  ;;  %v978_v29 = vrot.slane %v976_v54, 4  ;;  %v982_v20 = vshll.u32 %v3071_v7, 16 }
  0xa3   : > { %1360 = vrot.lane.b32.xlu0 %v1349_v55, %s2468_s13  ;;  %2282 = vmatpush.bf16.msra.mxu2 %v2265_v61  ;;  %v1520_v62 = vpack.c.b16 %v1511_v14, %v1510_v4  ;;  %v969_v28 = vor.u32 %v968_v22, %v965_v19  ;;  %v2006_v15 = vrot.slane %v468_v16, 9  ;;  %v535_v32 = vrot.slane %v2952_v42, 5 }
  0xa4   : > { %2283 = vmatpush.bf16.msra.mxu3 %v2265_v61  ;;  %v979_v40 = vor.u32 %v978_v29, %v974_v38  ;;  %v984_v43 = vrot.slane %v982_v20, 5  ;;  %v538_v17 = vrot.slane %v2958_v27, 5  ;;  %v1351_v46 = vpack.c.b16 %v1341_v18, %v1340_v11  ;;  %v2082_v18 = vld [vmem:[%s2582_s26 + $0x54] sm:$0xe] }
  0xa5   : > { %1324 = vrot.lane.b32.xlu1 %v2254_v5, %s2463_s27  ;;  %1232 = vrot.lane.b32.xlu2 %v1221_v39, %s2467_s12  ;;  %v1227_v33 = vpop.permute.xlu0 %1226  ;;  %v970_v47 = vrot.slane %v969_v28, 4  ;;  %v537_v45 = vrot.slane %v535_v32, 4  ;;  %v536_v55 = vsel %vm2588_vm4, %v2006_v15, %v535_v32  ;;  %v1011_v2 = vshrl.u32 %v2063_v35, 16  ;;  %v470_v28 = vld [vmem:[%s2582_s26 + $0x54] sm:$0xe] }
  0xa6   : > { %v1541_v36 = vsel %vm1538_vm7, %v2241_v31, %v1227_v33  ;;  %v980_v25 = vrot.slane %v979_v40, 4  ;;  %v1014_v59 = vshll.u32 %v2063_v35, 16  ;;  %vm1706_vm15 = vcmask 293888   ;;  %v2262_v15 = vld [vmem:[%s2582_s26 + $0x54] sm:$0xff]  ;;  %v3135_v40 = vld [vmem:[%s2582_s26 + $0x5c] sm:$0x1] }
  0xa7   : > { %v1565_v12 = vsel %vm1563_vm8, %v1541_v36, %v3047_v21  ;;  %v975_v27 = vsel %vm2618_vm5, %v970_v47, %v974_v38  ;;  %v539_v21 = vsel %vm2588_vm4, %v537_v45, %v538_v17  ;;  %v1252_v39 = vunpack.c.l.b16 %v536_v55 }
  0xa8   : > { %v1355_v48 = vpop.permute.xlu1 %1354  ;;  %v1582_v42 = vsel %vm1580_vm9, %v1565_v12, %v3010_v60  ;;  %v985_v56 = vsel %vm2618_vm5, %v980_v25, %v984_v43  ;;  %v1464_v61 = vunpack.c.l.b16 %v975_v27  ;;  %v1013_v3 = vrot.slane %v1011_v2, 4 }
  0xa9   : > { %v1599_v50 = vsel %vm1597_vm10, %v1582_v42, %v1355_v48  ;;  %v1465_v63 = vunpack.c.l.b16 %v985_v56  ;;  %v1016_v26 = vrot.slane %v1014_v59, 5  ;;  %v1253_v4 = vunpack.c.l.b16 %v539_v21  ;;  %v2040_v42 = vld [vmem:[%s2582_s26 + $0x48] sm:$0xe]  ;;  %v3154_v56 = vld [vmem:[%s2582_s26 + $0x64] sm:$0xf] }
  0xaa   : > { %v1616_v60 = vsel %vm1614_vm11, %v1599_v50, %v1395_v30  ;;  %v1020_v5 = vshll.u32 %v2064_v52, 16  ;;  %v1024_v44 = vshrl.u32 %v2064_v52, 16  ;;  %v1030_v49 = vshll.u32 %v3103_v58, 16 }
  0xab   : > { %1364 = vrot.lane.b32.xlu0 %v1351_v46, %s2468_s13  ;;  %v1633_v9 = vsel %vm1631_vm12, %v1616_v60, %v3039_v41  ;;  %v1017_v31 = vor.u32 %v1016_v26, %v1013_v3  ;;  %v2046_v34 = vrot.slane %v2038_v8, 9  ;;  %v829_v13 = vrot.slane %v2983_v23, 5  ;;  %v3162_v26 = vld [vmem:[%s2582_s26 + $0x68] sm:$0x1] }
  0xac   : > { %v1477_v54 = vpack.c.b16 %v1465_v63, %v1464_v61  ;;  %v1022_v16 = vrot.slane %v1020_v5, 5  ;;  %v1026_v11 = vrot.slane %v1024_v44, 4  ;;  %v1263_v29 = vpack.c.b16 %v1253_v4, %v1252_v39  ;;  %v2042_v61 = vld [vmem:[%s2582_s26 + $0x60] sm:$0xe] }
  0xad   : > { %1448 = vrot.lane.b32.xlu1 %v2260_v51, %s2464_s7  ;;  %1534 = vrot.lane.b32.xlu2 %v1520_v62, %s2466_s11  ;;  %v1483_v10 = vpop.permute.xlu0 %1482  ;;  %v1018_v41 = vrot.slane %v1017_v31, 4  ;;  %v830_v38 = vsel %vm2588_vm4, %v2046_v34, %v829_v13  ;;  %v831_v23 = vrot.slane %v829_v13, 4  ;;  %v1032_v30 = vrot.slane %v1030_v49, 5  ;;  %v3127_v62 = vld [vmem:[%s2582_s26 + $0x58] sm:$0xf] }
  0xae   : > { %v1650_v14 = vsel %vm1648_vm13, %v1633_v9, %v1483_v10  ;;  %v1027_v20 = vor.u32 %v1026_v11, %v1022_v16  ;;  %v832_v33 = vrot.slane %v2989_v1, 5  ;;  %v2090_v32 = vrot.slane %v2082_v18, 9  ;;  %v2243_v49 = vld [vmem:[%s2582_s26 + $0x18] sm:$0xff] }
  0xaf   : > { %v3118_v19 = vpop.permute.xlu2 %1230  ;;  %v1667_v22 = vsel %vm1665_vm14, %v1650_v14, %v3056_v53  ;;  %v1023_v53 = vsel %vm2618_vm5, %v1018_v41, %v1022_v16  ;;  %v1151_v35 = vrot.slane %v2064_v52, 5  ;;  %v1154_v36 = vrot.slane %v3103_v58, 5 }
  0xb0   : > { %2197 = vmatmul.msk.bf16.vlgmr.msra.gmra.mxu0 %vm1706_vm15, %v1667_v22  ;;  %v1028_v17 = vrot.slane %v1027_v20, 4  ;;  %v833_v1 = vsel %vm2588_vm4, %v831_v23, %v832_v33  ;;  %v1376_v12 = vunpack.c.l.b16 %v830_v38  ;;  %v1468_v46 = vunpack.c.l.b16 %v1023_v53  ;;  %v3181_v38 = vld [vmem:[%s2582_s26 + $0x70] sm:$0xf]  ;;  %v258_v23 = vld [vmem:[%s2582_s26 + $0x54] sm:$0xf] }
  0xb1   : > { %v1152_v47 = vsel %vm2588_vm4, %v2090_v32, %v1151_v35  ;;  %v1153_v45 = vrot.slane %v1151_v35, 4  ;;  %v2008_v48 = vrot.slane %v470_v28, 9  ;;  %v1377_v55 = vunpack.c.l.b16 %v833_v1  ;;  %v2084_v28 = vld [vmem:[%s2582_s26 + $0x6c] sm:$0xe] }
  0xb2   : > { %v3137_v43 = vpop.permute.xlu1 %1234  ;;  %v1033_v25 = vsel %vm2618_vm5, %v1028_v17, %v1032_v30  ;;  %v549_v2 = vrot.slane %v3127_v62, 5  ;;  %v552_v51 = vrot.slane %v3135_v40, 5  ;;  %v1508_v52 = vunpack.c.l.b16 %v1152_v47 }
  0xb3   : > { %1488 = vrot.lane.b32.xlu0 %v1477_v54, %s2469_s14  ;;  %v1469_v27 = vunpack.c.l.b16 %v1033_v25  ;;  %v1155_v21 = vsel %vm2588_vm4, %v1153_v45, %v1154_v36  ;;  %v2048_v60 = vrot.slane %v2040_v42, 9  ;;  %v843_v39 = vrot.slane %v3021_v57, 5  ;;  %v2080_v57 = vld [vmem:[%s2582_s26 + $0x3c] sm:$0xe]  ;;  %v3199_v36 = vld [vmem:[%s2582_s26 + $0x74] sm:$0x1] }
  0xb4   : > { %v1509_v58 = vunpack.c.l.b16 %v1155_v21  ;;  %v551_v59 = vrot.slane %v549_v2, 4  ;;  %v846_v3 = vrot.slane %v3024_v24, 5  ;;  %v1389_v4 = vpack.c.b16 %v1377_v55, %v1376_v12  ;;  %v2256_v25 = vld [vmem:[%s2582_s26 + $0x60] sm:$0xff] }
  0xb5   : > { %1452 = vrot.lane.b32.xlu1 %v2262_v15, %s2464_s7  ;;  %1276 = vrot.lane.b32.xlu2 %v1263_v29, %s2465_s8  ;;  %v1271_v50 = vpop.permute.xlu0 %1270  ;;  %v1479_v63 = vpack.c.b16 %v1469_v27, %v1468_v46  ;;  %v550_v5 = vsel %vm2588_vm4, %v2008_v48, %v549_v2  ;;  %v845_v10 = vrot.slane %v843_v39, 4  ;;  %v2050_v31 = vrot.slane %v2042_v61, 9  ;;  %v2025_v48 = vld [vmem:[%s2582_s26 + $0x60] sm:$0xf] }
  0xb6   : > { %v553_v44 = vsel %vm2588_vm4, %v551_v59, %v552_v51  ;;  %v1519_v9 = vpack.c.b16 %v1509_v58, %v1508_v52  ;;  %v857_v34 = vrot.slane %v3154_v56, 5  ;;  %v844_v24 = vsel %vm2588_vm4, %v2048_v60, %v843_v39 }
  0xb7   : > { %v3157_v8 = vpop.permute.xlu2 %1318  ;;  %v860_v13 = vrot.slane %v3162_v26, 5  ;;  %v1137_v14 = vrot.slane %v3062_v0, 5  ;;  %v1256_v16 = vunpack.c.l.b16 %v550_v5  ;;  %v1257_v11 = vunpack.c.l.b16 %v553_v44 }
  0xb8   : > { %v847_v18 = vsel %vm2588_vm4, %v845_v10, %v846_v3  ;;  %v859_v22 = vrot.slane %v857_v34, 4  ;;  %v2088_v41 = vrot.slane %v2080_v57, 9  ;;  %v1547_v29 = vsel %vm1538_vm7, %v2243_v49, %v3118_v19  ;;  %v2067_v57 = vld [vmem:[%s2582_s26 + $0x6c] sm:$0xf] }
  0xb9   : > { %v1380_v20 = vunpack.c.l.b16 %v844_v24  ;;  %v1381_v30 = vunpack.c.l.b16 %v847_v18  ;;  %v858_v33 = vsel %vm2588_vm4, %v2050_v31, %v857_v34  ;;  %v1139_v53 = vrot.slane %v1137_v14, 4 }
  0xba   : > { %v3175_v54 = vpop.permute.xlu1 %1358  ;;  %v861_v15 = vsel %vm2588_vm4, %v859_v22, %v860_v13  ;;  %v1140_v19 = vrot.slane %v3071_v7, 5  ;;  %v1265_v35 = vpack.c.b16 %v1257_v11, %v1256_v16  ;;  %v1165_v17 = vrot.slane %v3181_v38, 5  ;;  %v2245_v11 = vld [vmem:[%s2582_s26 + $0x30] sm:$0xff] }
  0xbb   : > { %1492 = vrot.lane.b32.xlu0 %v1479_v63, %s2469_s14  ;;  %v440_v1 = vshrl.u32 %v258_v23, 16  ;;  %v1569_v12 = vsel %vm1563_vm8, %v1547_v29, %v1271_v50  ;;  %v1384_v46 = vunpack.c.l.b16 %v858_v33  ;;  %v1138_v47 = vsel %vm2588_vm4, %v2088_v41, %v1137_v14 }
  0xbc   : > { %v2092_v45 = vrot.slane %v2084_v28, 9  ;;  %v1391_v42 = vpack.c.b16 %v1381_v30, %v1380_v20  ;;  %v1385_v55 = vunpack.c.l.b16 %v861_v15  ;;  %v443_v2 = vshll.u32 %v258_v23, 16  ;;  %v2264_v20 = vld [vmem:[%s2582_s26 + $0x6c] sm:$0xff] }
  0xbd   : > { %1400 = vrot.lane.b32.xlu2 %v1389_v4, %s2470_s15  ;;  %1532 = vrot.lane.b32.xlu1 %v1519_v9, %s2466_s11  ;;  %v3188_v0 = vpop.permute.xlu0 %1274  ;;  %v442_v7 = vrot.slane %v440_v1, 4  ;;  %v1141_v51 = vsel %vm2588_vm4, %v1139_v53, %v1140_v19  ;;  %v1168_v27 = vrot.slane %v3199_v36, 5  ;;  %v449_v21 = vshll.u32 %v3127_v62, 16 }
  0xbe   : > { %v453_v50 = vshrl.u32 %v3127_v62, 16  ;;  %v1167_v52 = vrot.slane %v1165_v17, 4  ;;  %v445_v58 = vrot.slane %v443_v2, 5  ;;  %v459_v59 = vshll.u32 %v3135_v40, 16 }
  0xbf   : > { %v3196_v32 = vpop.permute.xlu2 %1322  ;;  %v751_v60 = vshrl.u32 %v2025_v48, 16  ;;  %v451_v61 = vrot.slane %v449_v21, 5  ;;  %v754_v39 = vshll.u32 %v2025_v48, 16  ;;  %v760_v3 = vshll.u32 %v3154_v56, 16 }
  0xc0   : > { %v455_v63 = vrot.slane %v453_v50, 4  ;;  %v1586_v4 = vsel %vm1580_vm9, %v1569_v12, %v3157_v8  ;;  %v1504_v44 = vunpack.c.l.b16 %v1138_v47  ;;  %v1505_v40 = vunpack.c.l.b16 %v1141_v51 }
  0xc1   : > { %v446_v49 = vor.u32 %v445_v58, %v442_v7  ;;  %v461_v10 = vrot.slane %v459_v59, 5  ;;  %v753_v31 = vrot.slane %v751_v60, 4  ;;  %v756_v34 = vrot.slane %v754_v39, 5 }
  0xc2   : > { %v456_v9 = vor.u32 %v455_v63, %v451_v61  ;;  %v1393_v13 = vpack.c.b16 %v1385_v55, %v1384_v46  ;;  %v762_v14 = vrot.slane %v760_v3, 5  ;;  %v764_v16 = vshrl.u32 %v3154_v56, 16 }
  0xc3   : > { %1280 = vrot.lane.b32.xlu0 %v1265_v35, %s2465_s8  ;;  %v447_v8 = vrot.slane %v446_v49, 4  ;;  %v1166_v18 = vsel %vm2588_vm4, %v2092_v45, %v1165_v17  ;;  %v1169_v22 = vsel %vm2588_vm4, %v1167_v52, %v1168_v27  ;;  %v770_v23 = vshll.u32 %v3162_v26, 16 }
  0xc4   : > { %v3217_v5 = vpop.permute.xlu1 %1362  ;;  %v457_v41 = vrot.slane %v456_v9, 4  ;;  %v1517_v29 = vpack.c.b16 %v1505_v40, %v1504_v44  ;;  %v757_v30 = vor.u32 %v756_v34, %v753_v31  ;;  %v766_v33 = vrot.slane %v764_v16, 4 }
  0xc5   : > { %1404 = vrot.lane.b32.xlu2 %v1391_v42, %s2470_s15  ;;  %1328 = vrot.lane.b32.xlu1 %v2256_v25, %s2463_s27  ;;  %v1399_v62 = vpop.permute.xlu0 %1398  ;;  %v1059_v28 = vshrl.u32 %v2067_v57, 16  ;;  %v1603_v15 = vsel %vm1597_vm10, %v1586_v4, %v3175_v54  ;;  %v452_v56 = vsel %vm2618_vm5, %v447_v8, %v451_v61  ;;  %v1062_v19 = vshll.u32 %v2067_v57, 16 }
  0xc6   : > { %v462_v53 = vsel %vm2618_vm5, %v457_v41, %v461_v10  ;;  %v1512_v6 = vunpack.c.l.b16 %v1166_v18  ;;  %v1513_v35 = vunpack.c.l.b16 %v1169_v22  ;;  %v767_v26 = vor.u32 %v766_v33, %v762_v14 }
  0xc7   : > { %v1447_v24 = vpop.permute.xlu2 %1446  ;;  %v1068_v17 = vshll.u32 %v3181_v38, 16  ;;  %v1553_v1 = vsel %vm1538_vm7, %v2245_v11, %v3137_v43  ;;  %v1620_v12 = vsel %vm1614_vm11, %v1603_v15, %v1399_v62  ;;  %v772_v54 = vrot.slane %v770_v23, 5 }
  0xc8   : > { %v1072_v46 = vshrl.u32 %v3181_v38, 16  ;;  %v1216_v45 = vunpack.c.l.b16 %v452_v56  ;;  %v1217_v48 = vunpack.c.l.b16 %v462_v53  ;;  %v758_v42 = vrot.slane %v757_v30, 4 }
  0xc9   : > { %v1061_v25 = vrot.slane %v1059_v28, 4  ;;  %v768_v55 = vrot.slane %v767_v26, 4  ;;  %v1064_v7 = vrot.slane %v1062_v19, 5  ;;  %v1070_v2 = vrot.slane %v1068_v17, 5 }
  0xca   : > { %v1074_v51 = vrot.slane %v1072_v46, 4  ;;  %v1521_v21 = vpack.c.b16 %v1513_v35, %v1512_v6  ;;  %v1573_v50 = vsel %vm1563_vm8, %v1553_v1, %v3188_v0  ;;  %v1637_v38 = vsel %vm1631_vm12, %v1620_v12, %v1447_v24  ;;  %v2247_v6 = vld [vmem:[%s2582_s26 + $0x48] sm:$0xff] }
  0xcb   : > { %1408 = vrot.lane.b32.xlu0 %v1393_v13, %s2470_s15  ;;  %v1225_v52 = vpack.c.b16 %v1217_v48, %v1216_v45  ;;  %v763_v58 = vsel %vm2618_vm5, %v758_v42, %v762_v14  ;;  %v773_v59 = vsel %vm2618_vm5, %v768_v55, %v772_v54  ;;  %v1065_v60 = vor.u32 %v1064_v7, %v1061_v25 }
  0xcc   : > { %v1075_v61 = vor.u32 %v1074_v51, %v1070_v2  ;;  %v1078_v63 = vshll.u32 %v3199_v36, 16  ;;  %v1590_v39 = vsel %vm1580_vm9, %v1573_v50, %v3196_v32  ;;  %v1344_v4 = vunpack.c.l.b16 %v763_v58 }
  0xcd   : > { %1528 = vrot.lane.b32.xlu2 %v1517_v29, %s2466_s11  ;;  %1456 = vrot.lane.b32.xlu1 %v2264_v20, %s2464_s7  ;;  %v1403_v47 = vpop.permute.xlu0 %1402  ;;  %v1345_v62 = vunpack.c.l.b16 %v773_v59  ;;  %v1066_v40 = vrot.slane %v1065_v60, 4  ;;  %v1607_v36 = vsel %vm1597_vm10, %v1590_v39, %v3217_v5  ;;  %v2242_v20 = vld [vmem:[%s2582_s26 + $0xc] sm:$0xff]  ;;  %v2244_v60 = vld [vmem:[%s2582_s26 + $0x24] sm:$0xff] }
  0xce   : > { %v1076_v49 = vrot.slane %v1075_v61, 4  ;;  %v1080_v9 = vrot.slane %v1078_v63, 5  ;;  %v1624_v32 = vsel %vm1614_vm11, %v1607_v36, %v1403_v47 }
  0xcf   : > { %v1487_v27 = vpop.permute.xlu1 %1486  ;;  %v1451_v43 = vpop.permute.xlu2 %1450  ;;  %v1353_v34 = vpack.c.b16 %v1345_v62, %v1344_v4  ;;  %v1071_v57 = vsel %vm2618_vm5, %v1066_v40, %v1070_v2  ;;  %v2246_v4 = vld [vmem:[%s2582_s26 + $0x3c] sm:$0xff] }
  0xd0   : > { %v1654_v0 = vsel %vm1648_vm13, %v1637_v38, %v1487_v27  ;;  %v1081_v24 = vsel %vm2618_vm5, %v1076_v49, %v1080_v9  ;;  %v1641_v13 = vsel %vm1631_vm12, %v1624_v32, %v1451_v43  ;;  %v1472_v14 = vunpack.c.l.b16 %v1071_v57 }
  0xd1   : > { %v1473_v16 = vunpack.c.l.b16 %v1081_v24 }
  0xd3   : > { %1536 = vrot.lane.b32.xlu0 %v1521_v21, %s2466_s11  ;;  %v1481_v41 = vpack.c.b16 %v1473_v16, %v1472_v14 }
  0xd5   : > { %1240 = vrot.lane.b32.xlu2 %v1225_v52, %s2467_s12  ;;  %v1527_v3 = vpop.permute.xlu0 %1526 }
  0xd6   : > { %v1671_v44 = vsel %vm1665_vm14, %v1654_v0, %v1527_v3 }
  0xd7   : > { %v1229_v10 = vpop.permute.xlu1 %1228  ;;  %v1491_v31 = vpop.permute.xlu2 %1490  ;;  %2199 = vmatmul.msk.bf16.vlgmr.msra.gmra.mxu1 %vm1706_vm15, %v1671_v44 }
  0xd8   : > { %v1658_v11 = vsel %vm1648_vm13, %v1641_v13, %v1491_v31  ;;  %v1544_v33 = vsel %vm1538_vm7, %v2242_v20, %v1229_v10 }
  0xdd   : > { %1368 = vrot.lane.b32.xlu2 %v1353_v34, %s2468_s13  ;;  %v1269_v8 = vpop.permute.xlu0 %1268 }
  0xde   : > { %v1567_v56 = vsel %vm1563_vm8, %v1544_v33, %v1269_v8 }
  0xdf   : > { %v1531_v5 = vpop.permute.xlu1 %1530  ;;  %v1239_v18 = vpop.permute.xlu2 %1238 }
  0xe0   : > { %v1675_v22 = vsel %vm1665_vm14, %v1658_v11, %v1531_v5  ;;  %v1559_v12 = vsel %vm1538_vm7, %v2247_v6, %v1239_v18 }
  0xe1   : > { %2201 = vmatmul.msk.bf16.vlgmr.msra.gmra.mxu2 %vm1706_vm15, %v1675_v22 }
  0xe5   : > { %1496 = vrot.lane.b32.xlu2 %v1481_v41, %s2469_s14  ;;  %v1317_v37 = vpop.permute.xlu0 %1316 }
  0xe6   : > { %v1584_v53 = vsel %vm1580_vm9, %v1567_v56, %v1317_v37 }
  0xe7   : > { %v1279_v23 = vpop.permute.xlu1 %1278  ;;  %v1357_v29 = vpop.permute.xlu2 %1356 }
  0xe8   : > { %v1601_v35 = vsel %vm1597_vm10, %v1584_v53, %v1357_v29  ;;  %v1577_v46 = vsel %vm1563_vm8, %v1559_v12, %v1279_v23  ;;  %v2248_v29 = vld [vmem:[%s2582_s26 + $0x54] sm:$0xff] }
  0xed   : > { %v1327_v30 = vpop.permute.xlu0 %1326 }
  0xee   : > { %v1594_v48 = vsel %vm1580_vm9, %v1577_v46, %v1327_v30 }
  0xef   : > { %v1397_v28 = vpop.permute.xlu1 %1396  ;;  %v1367_v15 = vpop.permute.xlu2 %1366 }
  0xf0   : > { %v1618_v1 = vsel %vm1614_vm11, %v1601_v35, %v1397_v28  ;;  %v1611_v7 = vsel %vm1597_vm10, %v1594_v48, %v1367_v15 }
  0xf5   : > { %v1445_v19 = vpop.permute.xlu0 %1444 }
  0xf6   : > { %v1635_v54 = vsel %vm1631_vm12, %v1618_v1, %v1445_v19 }
  0xf7   : > { %v1407_v26 = vpop.permute.xlu1 %1406  ;;  %v1485_v17 = vpop.permute.xlu2 %1484 }
  0xf8   : > { %v1652_v47 = vsel %vm1648_vm13, %v1635_v54, %v1485_v17  ;;  %v1628_v2 = vsel %vm1614_vm11, %v1611_v7, %v1407_v26 }
  0xfd   : > { %v1455_v45 = vpop.permute.xlu0 %1454 }
  0xfe   : > { %v1645_v51 = vsel %vm1631_vm12, %v1628_v2, %v1455_v45 }
  0xff   : > { %v1525_v42 = vpop.permute.xlu1 %1524  ;;  %v1233_v25 = vpop.permute.xlu2 %1232 }
 0x100   : > { %v1669_v55 = vsel %vm1665_vm14, %v1652_v47, %v1525_v42  ;;  %v1550_v0 = vsel %vm1538_vm7, %v2244_v60, %v1233_v25  ;;  %v2365_v25 = vld [vmem:[%s3401_s2] ss:$0 sm:$0xff] }
 0x101   : > { %2198 = vmatmul.msk.bf16.gmra.mxu0 %vm1706_vm15, %v1669_v55 }
 0x105   : > { %v1495_v27 = vpop.permute.xlu0 %1494 }
 0x106   : > { %v1662_v43 = vsel %vm1648_vm13, %v1645_v51, %v1495_v27 }
 0x107   : > { %v1273_v21 = vpop.permute.xlu1 %1272  ;;  %v1535_v50 = vpop.permute.xlu2 %1534 }
 0x108   : > { %v1679_v38 = vsel %vm1665_vm14, %v1662_v43, %v1535_v50  ;;  %v1571_v3 = vsel %vm1563_vm8, %v1550_v0, %v1273_v21 }
 0x109   : > { %2203 = vmatmul.msk.bf16.vlgmr.msra.gmra.mxu3 %vm1706_vm15, %v1679_v38 }
 0x10d   : > { %v1237_v52 = vpop.permute.xlu0 %1236 }
 0x10e   : > { %v1556_v10 = vsel %vm1538_vm7, %v2246_v4, %v1237_v52 }
 0x10f   : > { %v1321_v58 = vpop.permute.xlu1 %1320  ;;  %v1277_v59 = vpop.permute.xlu2 %1276 }
 0x110   : > { %v1588_v44 = vsel %vm1580_vm9, %v1571_v3, %v1321_v58  ;;  %v1575_v36 = vsel %vm1563_vm8, %v1556_v10, %v1277_v59 }
 0x115   : > { %v1361_v61 = vpop.permute.xlu0 %1360 }
 0x116   : > { %v1605_v40 = vsel %vm1597_vm10, %v1588_v44, %v1361_v61 }
 0x117   : > { %v1325_v63 = vpop.permute.xlu1 %1324  ;;  %v1401_v39 = vpop.permute.xlu2 %1400 }
 0x118   : > { %v1622_v31 = vsel %vm1614_vm11, %v1605_v40, %v1401_v39  ;;  %v1592_v57 = vsel %vm1580_vm9, %v1575_v36, %v1325_v63 }
 0x11d   : > { %v1365_v62 = vpop.permute.xlu0 %1364 }
 0x11e   : > { %v1609_v13 = vsel %vm1597_vm10, %v1592_v57, %v1365_v62 }
 0x11f   : > { %v1449_v49 = vpop.permute.xlu1 %1448  ;;  %v1405_v9 = vpop.permute.xlu2 %1404 }
 0x120   : > { %v1639_v32 = vsel %vm1631_vm12, %v1622_v31, %v1449_v49  ;;  %v1626_v11 = vsel %vm1614_vm11, %v1609_v13, %v1405_v9 }
 0x125   : > { %v1489_v34 = vpop.permute.xlu0 %1488 }
 0x126   : > { %v1656_v24 = vsel %vm1648_vm13, %v1639_v32, %v1489_v34 }
 0x127   : > { %v1453_v8 = vpop.permute.xlu1 %1452  ;;  %v1529_v14 = vpop.permute.xlu2 %1528 }
 0x128   : > { %v1673_v16 = vsel %vm1665_vm14, %v1656_v24, %v1529_v14  ;;  %v1643_v5 = vsel %vm1631_vm12, %v1626_v11, %v1453_v8 }
 0x129   : > { %2200 = vmatmul.msk.bf16.gmra.mxu1 %vm1706_vm15, %v1673_v16 }
 0x12d   : > { %v1493_v18 = vpop.permute.xlu0 %1492  ;;  %v1736_v46 = vpop.f32.mrf.mxu0 }
 0x12e   : > { %v1660_v22 = vsel %vm1648_vm13, %v1643_v5, %v1493_v18  ;;  %v1737_v51 = vadd.f32 %v2365_v25, %v1736_v46 }
 0x12f   : > { %v1533_v41 = vpop.permute.xlu1 %1532  ;;  %v1241_v37 = vpop.permute.xlu2 %1240 }
 0x130   : > { %v1677_v23 = vsel %vm1665_vm14, %v1660_v22, %v1533_v41  ;;  %v1562_v20 = vsel %vm1538_vm7, %v2248_v29, %v1241_v37  ;;  %v1776_v38 = vmax.f32 %v1737_v51, 0.0 }
 0x131   : > { %2202 = vmatmul.msk.bf16.gmra.mxu2 %vm1706_vm15, %v1677_v23 }
 0x135   : > { %v1281_v30 = vpop.permute.xlu0 %1280  ;;  %v1738_v47 = vpop.f32.mrf.mxu0 }
 0x136   : > { %v1579_v28 = vsel %vm1563_vm8, %v1562_v20, %v1281_v30  ;;  %v1739_v7 = vadd.f32 %v2365_v25, %v1738_v47 }
 0x137   : > { %v1329_v33 = vpop.permute.xlu1 %1328  ;;  %v1369_v15 = vpop.permute.xlu2 %1368 }
 0x138   : > { %v1596_v56 = vsel %vm1580_vm9, %v1579_v28, %v1329_v33  ;;  %v1777_v21 = vmax.f32 %v1739_v7, 0.0 }
 0x139   : > { %v1613_v19 = vsel %vm1597_vm10, %v1596_v56, %v1369_v15 }
 0x13a   : > { %v1793_v58 = vadd.f32 %v1777_v21, %v1776_v38 }
 0x13d   : > { %v1409_v53 = vpop.permute.xlu0 %1408 }
 0x13e   : > { %v1630_v6 = vsel %vm1614_vm11, %v1613_v19, %v1409_v53 }
 0x13f   : > { %v1457_v35 = vpop.permute.xlu1 %1456  ;;  %v1497_v17 = vpop.permute.xlu2 %1496 }
 0x140   : > { %v1647_v26 = vsel %vm1631_vm12, %v1630_v6, %v1457_v35 }
 0x141   : > { %v1664_v1 = vsel %vm1648_vm13, %v1647_v26, %v1497_v17 }
 0x145   : > { %v1537_v12 = vpop.permute.xlu0 %1536 }
 0x146   : > { %v1681_v54 = vsel %vm1665_vm14, %v1664_v1, %v1537_v12 }
 0x147   : > { %2204 = vmatmul.msk.bf16.gmra.mxu3 %vm1706_vm15, %v1681_v54 }
 0x154   : > { %v1746_v45 = vpop.f32.mrf.mxu1 }
 0x155   : > { %v1747_v61 = vadd.f32 %v2365_v25, %v1746_v45 }
 0x157   : > { %v1780_v3 = vmax.f32 %v1747_v61, 0.0 }
 0x15c   : > { %v1748_v42 = vpop.f32.mrf.mxu1 }
 0x15d   : > { %v1749_v4 = vadd.f32 %v2365_v25, %v1748_v42 }
 0x15f   : > { %v1781_v9 = vmax.f32 %v1749_v4, 0.0 }
 0x164   : > { %v1756_v55 = vpop.f32.mrf.mxu2 }
 0x165   : > { %v1757_v34 = vadd.f32 %v2365_v25, %v1756_v55  ;;  %v1792_v55 = vld [vmem:[#allocation2] sm:$0x1] }
 0x167   : > { %v1784_v13 = vmax.f32 %v1757_v34, 0.0 }
 0x16c   : > { %v1758_v60 = vpop.f32.mrf.mxu2 }
 0x16d   : > { %v1759_v8 = vadd.f32 %v2365_v25, %v1758_v60 }
 0x16f   : > { %v1785_v18 = vmax.f32 %v1759_v8, 0.0 }
 0x17e   : > { %v1741_v48 = vpop.f32.mrf.mxu0 }
 0x17f   : > { %v1742_v27 = vadd.f32 %v2365_v25, %v1741_v48 }
 0x181   : > { %v1778_v52 = vmax.f32 %v1742_v27, 0.0 }
 0x183   : > { %v1794_v63 = vadd.f32 %v1793_v58, %v1778_v52 }
 0x186   : > { %v1743_v2 = vpop.f32.mrf.mxu0 }
 0x187   : > { %v1744_v50 = vadd.f32 %v2365_v25, %v1743_v2 }
 0x189   : > { %v1779_v59 = vmax.f32 %v1744_v50, 0.0 }
 0x18b   : > { %v1795_v39 = vadd.f32 %v1794_v63, %v1779_v59 }
 0x18c   : > { %v1766_v31 = vpop.f32.mrf.mxu3 }
 0x18d   : > { %v1796_v44 = vadd.f32 %v1795_v39, %v1780_v3  ;;  %v1767_v29 = vadd.f32 %v2365_v25, %v1766_v31 }
 0x18f   : > { %v1797_v36 = vadd.f32 %v1796_v44, %v1781_v9  ;;  %v1788_v28 = vmax.f32 %v1767_v29, 0.0 }
 0x194   : > { %v1768_v5 = vpop.f32.mrf.mxu3 }
 0x195   : > { %v1769_v15 = vadd.f32 %v2365_v25, %v1768_v5 }
 0x197   : > { %v1789_v19 = vmax.f32 %v1769_v15, 0.0 }
 0x1a6   : > { %v1751_v43 = vpop.f32.mrf.mxu1 }
 0x1a7   : > { %v1752_v62 = vadd.f32 %v2365_v25, %v1751_v43 }
 0x1a9   : > { %v1782_v10 = vmax.f32 %v1752_v62, 0.0 }
 0x1ab   : > { %v1798_v57 = vadd.f32 %v1797_v36, %v1782_v10 }
 0x1ae   : > { %v1753_v0 = vpop.f32.mrf.mxu1 }
 0x1af   : > { %v1754_v40 = vadd.f32 %v2365_v25, %v1753_v0 }
 0x1b1   : > { %v1783_v32 = vmax.f32 %v1754_v40, 0.0 }
 0x1b3   : > { %v1799_v24 = vadd.f32 %v1798_v57, %v1783_v32 }
 0x1b4   : > { %v1761_v49 = vpop.f32.mrf.mxu2 }
 0x1b5   : > { %v1800_v16 = vadd.f32 %v1799_v24, %v1784_v13  ;;  %v1762_v11 = vadd.f32 %v2365_v25, %v1761_v49 }
 0x1b7   : > { %v1786_v41 = vmax.f32 %v1762_v11, 0.0  ;;  %v1801_v37 = vadd.f32 %v1800_v16, %v1785_v18 }
 0x1b9   : > { %v1802_v20 = vadd.f32 %v1801_v37, %v1786_v41 }
 0x1bc   : > { %v1763_v14 = vpop.f32.mrf.mxu2 }
 0x1bd   : > { %v1764_v22 = vadd.f32 %v2365_v25, %v1763_v14 }
 0x1bf   : > { %v1787_v23 = vmax.f32 %v1764_v22, 0.0 }
 0x1c1   : > { %v1803_v33 = vadd.f32 %v1802_v20, %v1787_v23 }
 0x1c3   : > { %v1804_v53 = vadd.f32 %v1803_v33, %v1788_v28 }
 0x1c5   : > { %v1805_v26 = vadd.f32 %v1804_v53, %v1789_v19 }
 0x1ca   : > { %v1771_v30 = vpop.f32.mrf.mxu3 }
 0x1cb   : > { %v1772_v56 = vadd.f32 %v2365_v25, %v1771_v30 }
 0x1cd   : > { %v1790_v6 = vmax.f32 %v1772_v56, 0.0 }
 0x1cf   : > { %v1806_v1 = vadd.f32 %v1805_v26, %v1790_v6 }
 0x1d2   : > { %v1773_v35 = vpop.f32.mrf.mxu3 }
 0x1d3   : > { %v1774_v17 = vadd.f32 %v2365_v25, %v1773_v35 }
 0x1d5   : > { %v1791_v12 = vmax.f32 %v1774_v17, 0.0 }
 0x1d7   : > { %v1807_v54 = vadd.f32 %v1806_v1, %v1791_v12 }
 0x1d9   : > { %v1808_v46 = vrot.slane %v1807_v54, 4 }
 0x1db   : > { %v1809_v47 = vadd.f32 %v1808_v46, %v1807_v54 }
 0x1dd   : > { %v1810_v45 = vrot.slane %v1809_v47, 2 }
 0x1df   : > { %v1811_v48 = vadd.f32 %v1810_v45, %v1809_v47 }
 0x1e1   : > { %v1812_v42 = vrot.slane %v1811_v48, 1 }
 0x1e3   : > { %v1813_v7 = vadd.f32 %v1812_v42, %v1811_v48  ;;  %1819 = sbr.rel (%p2205_p0) target bundleno = 654 (0x28e), region = 48 }
 0x1e5   : > { %v1814_v2 = vadd.f32 %v1813_v7, %v1792_v55 }
 0x1e7   : > { %1815 = vst [vmem:[#allocation2] sm:$0x1] %v1814_v2 }
 0x1e8   : > { %v2274_v51 = vld [vmem:[%s3402_s3 + $0x38] sm:$0xff]  ;;  %v2273_v25 = vld [vmem:[%s3402_s3 + $0x30] sm:$0xff]  ;;  %v2272_v27 = vld [vmem:[%s3402_s3 + $0x28] sm:$0xff] }
 0x1e9   : > { %1888 = vmatpush.bf16.msra.mxu0 %v2274_v51  ;;  %v2271_v43 = vld [vmem:[%s3402_s3 + $0x20] sm:$0xff]  ;;  %v2270_v21 = vld [vmem:[%s3402_s3 + $0x18] sm:$0xff]  ;;  %v2269_v50 = vld [vmem:[%s3402_s3 + $0x10] sm:$0xff] }
 0x1ea   : > { %v2268_v38 = vld [vmem:[%s3402_s3 + $0x8] sm:$0xff]  ;;  %v2267_v59 = vld [vmem:[%s3402_s3] sm:$0xff] }
 0x1eb   : > { %v1839_v61 = vld [vmem:[%s3403_s4] sm:$0x1] }
 0x1ed   : > { %1889 = vmatpush.bf16.msra.mxu0 %v2273_v25 }
 0x1ee   : > { %v1820_v52 = vld [vmem:[#allocation2] sm:$0x1] }
 0x1ef   : > { %v1821_v58 = vmul.f32 0.00390625, %v1820_v52 }
 0x1f1   : > { %1890 = vmatpush.bf16.msra.mxu0 %v2272_v27  ;;  %v1822_v60 = vpack.c.bf16 %v1821_v58, %v1821_v58 }
 0x1f5   : > { %1891 = vmatpush.bf16.msra.mxu0 %v2271_v43 }
 0x1f9   : > { %1892 = vmatpush.bf16.msra.mxu0 %v2270_v21 }
 0x1fd   : > { %1893 = vmatpush.bf16.msra.mxu0 %v2269_v50 }
 0x201   : > { %1894 = vmatpush.bf16.msra.mxu0 %v2268_v38 }
 0x205   : > { %1895 = vmatpush.bf16.msra.mxu0 %v2267_v59 }
 0x208   : > { %1896 = vmatmul.bf16.vlgmr.msra.gmra.mxu0 %v1822_v60 }
 0x285   : > { %v1897_v63 = vpop.f32.mrf.mxu0 }
 0x286   : > { %v1898_v39 = vadd.f32 %v1897_v63, %v1839_v61 }
 0x288   : > { %1901 = vst [vmem:[%s2578_s16] sm:$0x1] %v1898_v39 }
 0x28d   : > { %v1899_v0 = vpop.f32.mrf.mxu0 }
 0x28e PF: > { %s1911_s21 = scalar_lea.hbm %s3404_s5, %s2448_s22  ;;  %s1913_s17 = sshll.u32 %s2578_s16, 4  ;;  %s1914_s17 = int_to_ptr.vmem [resolvable:$true] %s1913_s17 }
 0x28f   : > { %s1915_s26 = sshll.u32 %s1911_s21, 4  ;;  %s3412_s27 = sand.u32 1, %s2436_s19   ;;  %s1916_s26 = int_to_ptr.hbm [resolvable:$true] %s1915_s26 }
 0x290   : > { %s1903_s7 = scalar_lea.sflag [#allocation4], %s3412_s27  ;;  %s2380_s8 = sshra.s32 %s1916_s26, 4  ;;  %s2381_s8 = int_to_ptr.hbm [resolvable:$true] %s2380_s8 }
 0x291   : > { %s2382_s11 = scalar_lea.hbm %s2381_s8, 1  ;;  %s2386_s14 = scalar_lea.hbm %s3404_s5, 2 }
 0x292   : > { %p2383_p1 = scmp.ne.s32.totalorder %s2381_s8, %s2382_s11  ;;  %p2387_p5 = scmp.lt.s32.totalorder %s2381_s8, %s3404_s5 }
 0x293   : > { %p2388_p6 = scmp.lt.s32.totalorder %s2386_s14, %s2382_s11 }
 0x294   : > { %p2384_p2 = pnand %p2383_p1, %p2550_p3 }
 0x295   : > { %p2389_p7 = por %p2388_p6, %p2387_p5 }
 0x296   : > { %p2385_p4 = pneg %p2384_p2 }
 0x298   : > { %p2390_p8 = pnand %p2389_p7, %p2385_p4 }
 0x29a   : > { %2393 = shalt.err (!%p2390_p8)
}
 0x29b   : > { %2285 = dma.vmem_to_hbm [thread:$0]  (%p2550_p3), %s1914_s17, 16, %s1916_s26, %s1903_s7  }
 0x29c PF: > { %p2291_p10 = scmp.ge.s32.totalorder %s2460_s25, 2  ;;  %s1927_s22 = sand.u32 1, %s2432_s18  }
 0x29d   : > { %s1928_s16 = scalar_lea.sflag [#allocation4], %s1927_s22 }
 0x29e   : > { %p2288_p11 = pnand %p2291_p10, %p2560_p9 }
 0x2a0   : > { %p2289_p12 = pneg %p2288_p11 }
 0x2a2   : > { %2427 = dma.done.wait (%p2289_p12), %s1928_s16, 16  }
 0x2a3   : > { %2429 = vsyncadd (%p2289_p12), %s1928_s16, 4294967280  ;;  %s18_s25 = sadd.s32 1, %s2460_s25   ;;  %s3413_s18 = smov %s2436_s19 }
 0x2a4   : > { %p15_p13 = scmp.ge.s32.totalorder %s18_s25, 6   ;;  %s3414_s19 = smov %s2440_s20 }
 0x2a5   : > { %s3415_s20 = smov %s2568_s9  ;;  %s3416_s21 = smov %s2452_s23 }
 0x2a6   : > { %s3417_s22 = smov %s2456_s24  ;;  %s3418_s23 = smov %s3421_s28 }
 0x2a7   : > { %s3419_s24 = smov %s3425_s29  ;;  %17 = sbr.rel (!%p15_p13) target bundleno = 5 (0x5), region = 86 }
 0x2ac   :  { %1933 = vsyncpa [#allocation4], 1 }
 0x2ad   :  { %1935 = vsyncpa [#allocation4 + $0x1], 1 }

</bundles_post_ra>
